<compile_context>
chip_gen: v5e
topology: v5e:2x2
jax: 0.10.0
libtpu: 0.0.40
codegen_flags: <defaults>
</compile_context>

<pallas_src>
import jax
import jax.numpy as jnp
from jax import lax
from jax.experimental import pallas as pl
from jax.experimental.pallas import tpu as pltpu


def _round_up(n, m):
    return (n + m - 1) // m * m


def gru_recurrence_kernel(gx_ref, whrz_ref, whh_ref, y_ref, h_out_ref):
    """Sequential GRU recurrence over T with precomputed input-gate terms.

    gx_ref:    (T, B, 3H)  x-projections + biases, gate order (r, z, n)
    whrz_ref:  (H, 2H)     fused hidden weights for the r and z gates
    whh_ref:   (H, H)      hidden weights for the candidate gate
    y_ref:     (T, B, H)   per-step hidden states (output)
    h_out_ref: (B, H)      final hidden state (output)
    """
    T, B, H = y_ref.shape

    def step(t, h_prev):
        g = gx_ref[t]                                          # (B, 3H)
        hrz = jnp.dot(h_prev, whrz_ref[...],
                      preferred_element_type=jnp.float32)      # (B, 2H)
        r = jax.nn.sigmoid(g[:, 0 * H:1 * H] + hrz[:, 0 * H:1 * H])
        z = jax.nn.sigmoid(g[:, 1 * H:2 * H] + hrz[:, 1 * H:2 * H])
        n = jnp.tanh(g[:, 2 * H:3 * H] +
                     jnp.dot(h_prev * r, whh_ref[...],
                             preferred_element_type=jnp.float32))
        h_new = z * h_prev + (1.0 - z) * n
        y_ref[t] = h_new.astype(y_ref.dtype)
        return h_new

    # h_0 = 0 reproduces the module's state=None first-step branch exactly.
    h0 = jnp.zeros((B, H), jnp.float32)
    h_last = lax.fori_loop(0, T, step, h0, unroll=True)
    h_out_ref[...] = h_last.astype(h_out_ref.dtype)


def gru_layer(x, wx, bx, wh_rz, wh_h):
    """x: (T, B, I); wx: (I, 3H); bx: (1, 3H); wh_rz: (H, 2H); wh_h: (H, H).

    Fused gate order along the 3H / 2H axes is (r, z, n) / (r, z).
    Returns (y, h) with y: (T, B, H) stacked per-step states, h: (B, H).
    """
    T, B, I = x.shape
    H = wh_h.shape[0]
    Bp = _round_up(B, 8)      # sublane-aligned batch
    Hp = _round_up(H, 128)    # lane-aligned hidden width

    # --- Pad parameters so every gate block is lane-tile aligned.  Padded
    # weight rows/cols are zero, which keeps padded hidden units exactly 0
    # and leaves the real outputs unchanged.
    def pad_gate_cols(w, n_gates):
        rows = w.shape[0]
        wp = jnp.zeros((rows, n_gates * Hp), w.dtype)
        for g in range(n_gates):
            wp = wp.at[:, g * Hp:g * Hp + H].set(w[:, g * H:(g + 1) * H])
        return wp

    wx_p = pad_gate_cols(wx, 3)                                   # (I, 3Hp)
    bx_p = pad_gate_cols(bx, 3)                                   # (1, 3Hp)
    wh_rz_p = jnp.zeros((Hp, 2 * Hp), wh_rz.dtype)
    wh_rz_p = wh_rz_p.at[:H, 0:H].set(wh_rz[:, :H])
    wh_rz_p = wh_rz_p.at[:H, Hp:Hp + H].set(wh_rz[:, H:])         # (Hp, 2Hp)
    wh_h_p = jnp.zeros((Hp, Hp), wh_h.dtype).at[:H, :H].set(wh_h)  # (Hp, Hp)

    x_p = jnp.zeros((T, Bp, I), x.dtype).at[:, :B, :].set(x)

    # Hoisted input projection: one big MXU matmul, off the sequential
    # critical path.  Only the truly sequential recurrence goes to Pallas.
    gx_all = (jnp.dot(x_p.reshape(T * Bp, I), wx_p,
                      preferred_element_type=jnp.float32)
              + bx_p).reshape(T, Bp, 3 * Hp)

    grid_spec = pltpu.PrefetchScalarGridSpec(
        num_scalar_prefetch=0,
        grid=(1,),
        in_specs=[
            pl.BlockSpec((T, Bp, 3 * Hp), lambda i: (0, 0, 0)),
            pl.BlockSpec((Hp, 2 * Hp), lambda i: (0, 0)),
            pl.BlockSpec((Hp, Hp), lambda i: (0, 0)),
        ],
        out_specs=[
            pl.BlockSpec((T, Bp, Hp), lambda i: (0, 0, 0)),
            pl.BlockSpec((Bp, Hp), lambda i: (0, 0)),
        ],
    )

    y_p, h_p = pl.pallas_call(
        gru_recurrence_kernel,
        out_shape=(
            jax.ShapeDtypeStruct((T, Bp, Hp), jnp.float32),
            jax.ShapeDtypeStruct((Bp, Hp), jnp.float32),
        ),
        grid_spec=grid_spec,
        compiler_params=pltpu.CompilerParams(
            dimension_semantics=("arbitrary",)),
    )(gx_all, wh_rz_p, wh_h_p)

    return y_p[:, :B, :H], h_p[:B, :H]


def gru_layer_ref(x, wx, bx, wh_rz, wh_h):
    """Pure-JAX reference reproducing the PyTorch GRULayer.forward (state=None)."""
    T, B, I = x.shape
    H = wh_h.shape[0]
    state = None
    ys = []
    for t in range(T):
        gx = x[t] @ wx + bx[0]
        gx_r, gx_z, gx_n = gx[:, :H], gx[:, H:2 * H], gx[:, 2 * H:]
        if state is None:
            update = jax.nn.sigmoid(gx_z)
            h_cand = jnp.tanh(gx_n)
            state = (1 - update) * h_cand
        else:
            hrz = state @ wh_rz
            reset = jax.nn.sigmoid(gx_r + hrz[:, :H])
            update = jax.nn.sigmoid(gx_z + hrz[:, H:])
            h_cand = jnp.tanh(gx_n + (state * reset) @ wh_h)
            state = update * state + (1 - update) * h_cand
        ys.append(state)
    return jnp.stack(ys, 0), state


if __name__ == "__main__":
    T, B, I, H = 8, 2, 16, 32
    key = jax.random.PRNGKey(0)
    kx, kwx, kbx, kwhrz, kwhh = jax.random.split(key, 5)

    # Deterministic parameter init (nn.Linear-like bounds); weights stored
    # pre-transposed for x @ W, fused gate order (r, z, n).
    bound_x = 1.0 / (I ** 0.5)
    bound_h = 1.0 / (H ** 0.5)
    wx = jax.random.uniform(kwx, (I, 3 * H), jnp.float32, -bound_x, bound_x)
    bx = jax.random.uniform(kbx, (1, 3 * H), jnp.float32, -bound_x, bound_x)
    wh_rz = jax.random.uniform(kwhrz, (H, 2 * H), jnp.float32, -bound_h, bound_h)
    wh_h = jax.random.uniform(kwhh, (H, H), jnp.float32, -bound_h, bound_h)

    x = jax.random.normal(kx, (T, B, I), jnp.float32)

    y, h = gru_layer(x, wx, bx, wh_rz, wh_h)
    jax.block_until_ready((y, h))

    y_ref, h_ref = gru_layer_ref(x, wx, bx, wh_rz, wh_h)
    assert jnp.allclose(y, y_ref, atol=1e-5, rtol=1e-5)
    assert jnp.allclose(h, h_ref, atol=1e-5, rtol=1e-5)

    print("KERNEL_OK")
</pallas_src>

<mosaic_0001>
module attributes {stable_mosaic.version = 11 : i64} {
  func.func @gru_recurrence_kernel(%arg0: i32, %arg1: memref<8x8x384xf32, #tpu.memory_space<vmem>>, %arg2: memref<128x256xf32, #tpu.memory_space<vmem>>, %arg3: memref<128x128xf32, #tpu.memory_space<vmem>>, %arg4: memref<8x8x128xf32, #tpu.memory_space<vmem>>, %arg5: memref<8x128xf32, #tpu.memory_space<vmem>>) attributes {dimension_semantics = [#tpu.dimension_semantics<arbitrary>], iteration_bounds = array<i64: 1>, scalar_prefetch = 0 : i64, scratch_operands = 0 : i64, tpu.core_type = #tpu.core_type<tc>, window_params = [{pipeline_mode = #tpu.pipeline_mode<synchronous>, transform_indices = @transform_0, window_bounds = array<i64: 8, 8, 384>}, {pipeline_mode = #tpu.pipeline_mode<synchronous>, transform_indices = @transform_1, window_bounds = array<i64: 128, 256>}, {pipeline_mode = #tpu.pipeline_mode<synchronous>, transform_indices = @transform_2, window_bounds = array<i64: 128, 128>}, {pipeline_mode = #tpu.pipeline_mode<synchronous>, transform_indices = @transform_3, window_bounds = array<i64: 8, 8, 128>}, {pipeline_mode = #tpu.pipeline_mode<synchronous>, transform_indices = @transform_4, window_bounds = array<i64: 8, 128>}]} {
    %cst = arith.constant 0.000000e+00 : f32
    %0 = vector.broadcast %cst : f32 to vector<8x128xf32>
    %c0_i32 = arith.constant 0 : i32
    %1 = arith.index_cast %c0_i32 : i32 to index
    %c0 = arith.constant 0 : index
    %c0_0 = arith.constant 0 : index
    %2 = vector.load %arg1[%1, %c0, %c0_0] : memref<8x8x384xf32, #tpu.memory_space<vmem>>, vector<1x8x384xf32>
    %3 = vector.shape_cast %2 : vector<1x8x384xf32> to vector<8x384xf32>
    %c0_1 = arith.constant 0 : index
    %c0_2 = arith.constant 0 : index
    %4 = vector.load %arg2[%c0_1, %c0_2] : memref<128x256xf32, #tpu.memory_space<vmem>>, vector<128x256xf32>
    %cst_3 = arith.constant dense<0.000000e+00> : vector<8x256xf32>
    %5 = tpu.matmul %0, %4, %cst_3 {dimension_numbers = #tpu.dot_dimension_numbers<[1], [0], [0], [1], [0, 0, 1, 1], [], []>} : vector<8x128xf32>, vector<128x256xf32>, vector<8x256xf32> -> vector<8x256xf32>
    %6 = vector.extract_strided_slice %3 {offsets = [0, 0], sizes = [8, 128], strides = [1, 1]} : vector<8x384xf32> to vector<8x128xf32>
    %7 = vector.extract_strided_slice %5 {offsets = [0, 0], sizes = [8, 128], strides = [1, 1]} : vector<8x256xf32> to vector<8x128xf32>
    %8 = arith.addf %6, %7 : vector<8x128xf32>
    %9 = arith.negf %8 : vector<8x128xf32>
    %10 = math.exp %9 : vector<8x128xf32>
    %cst_4 = arith.constant 1.000000e+00 : f32
    %11 = vector.broadcast %cst_4 : f32 to vector<8x128xf32>
    %12 = arith.addf %11, %10 : vector<8x128xf32>
    %13 = arith.divf %11, %12 : vector<8x128xf32>
    %14 = vector.extract_strided_slice %3 {offsets = [0, 128], sizes = [8, 128], strides = [1, 1]} : vector<8x384xf32> to vector<8x128xf32>
    %15 = vector.extract_strided_slice %5 {offsets = [0, 128], sizes = [8, 128], strides = [1, 1]} : vector<8x256xf32> to vector<8x128xf32>
    %16 = arith.addf %14, %15 : vector<8x128xf32>
    %17 = arith.negf %16 : vector<8x128xf32>
    %18 = math.exp %17 : vector<8x128xf32>
    %cst_5 = arith.constant 1.000000e+00 : f32
    %19 = vector.broadcast %cst_5 : f32 to vector<8x128xf32>
    %20 = arith.addf %19, %18 : vector<8x128xf32>
    %21 = arith.divf %19, %20 : vector<8x128xf32>
    %22 = vector.extract_strided_slice %3 {offsets = [0, 256], sizes = [8, 128], strides = [1, 1]} : vector<8x384xf32> to vector<8x128xf32>
    %23 = arith.mulf %0, %13 : vector<8x128xf32>
    %c0_6 = arith.constant 0 : index
    %c0_7 = arith.constant 0 : index
    %24 = vector.load %arg3[%c0_6, %c0_7] : memref<128x128xf32, #tpu.memory_space<vmem>>, vector<128x128xf32>
    %cst_8 = arith.constant dense<0.000000e+00> : vector<8x128xf32>
    %25 = tpu.matmul %23, %24, %cst_8 {dimension_numbers = #tpu.dot_dimension_numbers<[1], [0], [0], [1], [0, 0, 1, 1], [], []>} : vector<8x128xf32>, vector<128x128xf32>, vector<8x128xf32> -> vector<8x128xf32>
    %26 = arith.addf %22, %25 : vector<8x128xf32>
    %27 = math.tanh %26 : vector<8x128xf32>
    %28 = arith.mulf %21, %0 : vector<8x128xf32>
    %cst_9 = arith.constant 1.000000e+00 : f32
    %29 = vector.broadcast %cst_9 : f32 to vector<8x128xf32>
    %30 = arith.subf %29, %21 : vector<8x128xf32>
    %31 = arith.mulf %30, %27 : vector<8x128xf32>
    %32 = arith.addf %28, %31 : vector<8x128xf32>
    %33 = arith.index_cast %c0_i32 : i32 to index
    %c0_10 = arith.constant 0 : index
    %c0_11 = arith.constant 0 : index
    %34 = vector.load %arg4[%33, %c0_10, %c0_11] : memref<8x8x128xf32, #tpu.memory_space<vmem>>, vector<1x8x128xf32>
    %35 = vector.shape_cast %34 : vector<1x8x128xf32> to vector<8x128xf32>
    %36 = vector.shape_cast %32 : vector<8x128xf32> to vector<1x8x128xf32>
    tpu.vector_store %arg4[%33, %c0_10, %c0_11], %36 {strides = array<i32>} : memref<8x8x128xf32, #tpu.memory_space<vmem>>, vector<1x8x128xf32>,
    %c1_i32 = arith.constant 1 : i32
    %37 = arith.index_cast %c1_i32 : i32 to index
    %c0_12 = arith.constant 0 : index
    %c0_13 = arith.constant 0 : index
    %38 = vector.load %arg1[%37, %c0_12, %c0_13] : memref<8x8x384xf32, #tpu.memory_space<vmem>>, vector<1x8x384xf32>
    %39 = vector.shape_cast %38 : vector<1x8x384xf32> to vector<8x384xf32>
    %c0_14 = arith.constant 0 : index
    %c0_15 = arith.constant 0 : index
    %40 = vector.load %arg2[%c0_14, %c0_15] : memref<128x256xf32, #tpu.memory_space<vmem>>, vector<128x256xf32>
    %cst_16 = arith.constant dense<0.000000e+00> : vector<8x256xf32>
    %41 = tpu.matmul %32, %40, %cst_16 {dimension_numbers = #tpu.dot_dimension_numbers<[1], [0], [0], [1], [0, 0, 1, 1], [], []>} : vector<8x128xf32>, vector<128x256xf32>, vector<8x256xf32> -> vector<8x256xf32>
    %42 = vector.extract_strided_slice %39 {offsets = [0, 0], sizes = [8, 128], strides = [1, 1]} : vector<8x384xf32> to vector<8x128xf32>
    %43 = vector.extract_strided_slice %41 {offsets = [0, 0], sizes = [8, 128], strides = [1, 1]} : vector<8x256xf32> to vector<8x128xf32>
    %44 = arith.addf %42, %43 : vector<8x128xf32>
    %45 = arith.negf %44 : vector<8x128xf32>
    %46 = math.exp %45 : vector<8x128xf32>
    %cst_17 = arith.constant 1.000000e+00 : f32
    %47 = vector.broadcast %cst_17 : f32 to vector<8x128xf32>
    %48 = arith.addf %47, %46 : vector<8x128xf32>
    %49 = arith.divf %47, %48 : vector<8x128xf32>
    %50 = vector.extract_strided_slice %39 {offsets = [0, 128], sizes = [8, 128], strides = [1, 1]} : vector<8x384xf32> to vector<8x128xf32>
    %51 = vector.extract_strided_slice %41 {offsets = [0, 128], sizes = [8, 128], strides = [1, 1]} : vector<8x256xf32> to vector<8x128xf32>
    %52 = arith.addf %50, %51 : vector<8x128xf32>
    %53 = arith.negf %52 : vector<8x128xf32>
    %54 = math.exp %53 : vector<8x128xf32>
    %cst_18 = arith.constant 1.000000e+00 : f32
    %55 = vector.broadcast %cst_18 : f32 to vector<8x128xf32>
    %56 = arith.addf %55, %54 : vector<8x128xf32>
    %57 = arith.divf %55, %56 : vector<8x128xf32>
    %58 = vector.extract_strided_slice %39 {offsets = [0, 256], sizes = [8, 128], strides = [1, 1]} : vector<8x384xf32> to vector<8x128xf32>
    %59 = arith.mulf %32, %49 : vector<8x128xf32>
    %c0_19 = arith.constant 0 : index
    %c0_20 = arith.constant 0 : index
    %60 = vector.load %arg3[%c0_19, %c0_20] : memref<128x128xf32, #tpu.memory_space<vmem>>, vector<128x128xf32>
    %cst_21 = arith.constant dense<0.000000e+00> : vector<8x128xf32>
    %61 = tpu.matmul %59, %60, %cst_21 {dimension_numbers = #tpu.dot_dimension_numbers<[1], [0], [0], [1], [0, 0, 1, 1], [], []>} : vector<8x128xf32>, vector<128x128xf32>, vector<8x128xf32> -> vector<8x128xf32>
    %62 = arith.addf %58, %61 : vector<8x128xf32>
    %63 = math.tanh %62 : vector<8x128xf32>
    %64 = arith.mulf %57, %32 : vector<8x128xf32>
    %cst_22 = arith.constant 1.000000e+00 : f32
    %65 = vector.broadcast %cst_22 : f32 to vector<8x128xf32>
    %66 = arith.subf %65, %57 : vector<8x128xf32>
    %67 = arith.mulf %66, %63 : vector<8x128xf32>
    %68 = arith.addf %64, %67 : vector<8x128xf32>
    %69 = arith.index_cast %c1_i32 : i32 to index
    %c0_23 = arith.constant 0 : index
    %c0_24 = arith.constant 0 : index
    %70 = vector.load %arg4[%69, %c0_23, %c0_24] : memref<8x8x128xf32, #tpu.memory_space<vmem>>, vector<1x8x128xf32>
    %71 = vector.shape_cast %70 : vector<1x8x128xf32> to vector<8x128xf32>
    %72 = vector.shape_cast %68 : vector<8x128xf32> to vector<1x8x128xf32>
    tpu.vector_store %arg4[%69, %c0_23, %c0_24], %72 {strides = array<i32>} : memref<8x8x128xf32, #tpu.memory_space<vmem>>, vector<1x8x128xf32>,
    %c2_i32 = arith.constant 2 : i32
    %73 = arith.index_cast %c2_i32 : i32 to index
    %c0_25 = arith.constant 0 : index
    %c0_26 = arith.constant 0 : index
    %74 = vector.load %arg1[%73, %c0_25, %c0_26] : memref<8x8x384xf32, #tpu.memory_space<vmem>>, vector<1x8x384xf32>
    %75 = vector.shape_cast %74 : vector<1x8x384xf32> to vector<8x384xf32>
    %c0_27 = arith.constant 0 : index
    %c0_28 = arith.constant 0 : index
    %76 = vector.load %arg2[%c0_27, %c0_28] : memref<128x256xf32, #tpu.memory_space<vmem>>, vector<128x256xf32>
    %cst_29 = arith.constant dense<0.000000e+00> : vector<8x256xf32>
    %77 = tpu.matmul %68, %76, %cst_29 {dimension_numbers = #tpu.dot_dimension_numbers<[1], [0], [0], [1], [0, 0, 1, 1], [], []>} : vector<8x128xf32>, vector<128x256xf32>, vector<8x256xf32> -> vector<8x256xf32>
    %78 = vector.extract_strided_slice %75 {offsets = [0, 0], sizes = [8, 128], strides = [1, 1]} : vector<8x384xf32> to vector<8x128xf32>
    %79 = vector.extract_strided_slice %77 {offsets = [0, 0], sizes = [8, 128], strides = [1, 1]} : vector<8x256xf32> to vector<8x128xf32>
    %80 = arith.addf %78, %79 : vector<8x128xf32>
    %81 = arith.negf %80 : vector<8x128xf32>
    %82 = math.exp %81 : vector<8x128xf32>
    %cst_30 = arith.constant 1.000000e+00 : f32
    %83 = vector.broadcast %cst_30 : f32 to vector<8x128xf32>
    %84 = arith.addf %83, %82 : vector<8x128xf32>
    %85 = arith.divf %83, %84 : vector<8x128xf32>
    %86 = vector.extract_strided_slice %75 {offsets = [0, 128], sizes = [8, 128], strides = [1, 1]} : vector<8x384xf32> to vector<8x128xf32>
    %87 = vector.extract_strided_slice %77 {offsets = [0, 128], sizes = [8, 128], strides = [1, 1]} : vector<8x256xf32> to vector<8x128xf32>
    %88 = arith.addf %86, %87 : vector<8x128xf32>
    %89 = arith.negf %88 : vector<8x128xf32>
    %90 = math.exp %89 : vector<8x128xf32>
    %cst_31 = arith.constant 1.000000e+00 : f32
    %91 = vector.broadcast %cst_31 : f32 to vector<8x128xf32>
    %92 = arith.addf %91, %90 : vector<8x128xf32>
    %93 = arith.divf %91, %92 : vector<8x128xf32>
    %94 = vector.extract_strided_slice %75 {offsets = [0, 256], sizes = [8, 128], strides = [1, 1]} : vector<8x384xf32> to vector<8x128xf32>
    %95 = arith.mulf %68, %85 : vector<8x128xf32>
    %c0_32 = arith.constant 0 : index
    %c0_33 = arith.constant 0 : index
    %96 = vector.load %arg3[%c0_32, %c0_33] : memref<128x128xf32, #tpu.memory_space<vmem>>, vector<128x128xf32>
    %cst_34 = arith.constant dense<0.000000e+00> : vector<8x128xf32>
    %97 = tpu.matmul %95, %96, %cst_34 {dimension_numbers = #tpu.dot_dimension_numbers<[1], [0], [0], [1], [0, 0, 1, 1], [], []>} : vector<8x128xf32>, vector<128x128xf32>, vector<8x128xf32> -> vector<8x128xf32>
    %98 = arith.addf %94, %97 : vector<8x128xf32>
    %99 = math.tanh %98 : vector<8x128xf32>
    %100 = arith.mulf %93, %68 : vector<8x128xf32>
    %cst_35 = arith.constant 1.000000e+00 : f32
    %101 = vector.broadcast %cst_35 : f32 to vector<8x128xf32>
    %102 = arith.subf %101, %93 : vector<8x128xf32>
    %103 = arith.mulf %102, %99 : vector<8x128xf32>
    %104 = arith.addf %100, %103 : vector<8x128xf32>
    %105 = arith.index_cast %c2_i32 : i32 to index
    %c0_36 = arith.constant 0 : index
    %c0_37 = arith.constant 0 : index
    %106 = vector.load %arg4[%105, %c0_36, %c0_37] : memref<8x8x128xf32, #tpu.memory_space<vmem>>, vector<1x8x128xf32>
    %107 = vector.shape_cast %106 : vector<1x8x128xf32> to vector<8x128xf32>
    %108 = vector.shape_cast %104 : vector<8x128xf32> to vector<1x8x128xf32>
    tpu.vector_store %arg4[%105, %c0_36, %c0_37], %108 {strides = array<i32>} : memref<8x8x128xf32, #tpu.memory_space<vmem>>, vector<1x8x128xf32>,
    %c3_i32 = arith.constant 3 : i32
    %109 = arith.index_cast %c3_i32 : i32 to index
    %c0_38 = arith.constant 0 : index
    %c0_39 = arith.constant 0 : index
    %110 = vector.load %arg1[%109, %c0_38, %c0_39] : memref<8x8x384xf32, #tpu.memory_space<vmem>>, vector<1x8x384xf32>
    %111 = vector.shape_cast %110 : vector<1x8x384xf32> to vector<8x384xf32>
    %c0_40 = arith.constant 0 : index
    %c0_41 = arith.constant 0 : index
    %112 = vector.load %arg2[%c0_40, %c0_41] : memref<128x256xf32, #tpu.memory_space<vmem>>, vector<128x256xf32>
    %cst_42 = arith.constant dense<0.000000e+00> : vector<8x256xf32>
    %113 = tpu.matmul %104, %112, %cst_42 {dimension_numbers = #tpu.dot_dimension_numbers<[1], [0], [0], [1], [0, 0, 1, 1], [], []>} : vector<8x128xf32>, vector<128x256xf32>, vector<8x256xf32> -> vector<8x256xf32>
    %114 = vector.extract_strided_slice %111 {offsets = [0, 0], sizes = [8, 128], strides = [1, 1]} : vector<8x384xf32> to vector<8x128xf32>
    %115 = vector.extract_strided_slice %113 {offsets = [0, 0], sizes = [8, 128], strides = [1, 1]} : vector<8x256xf32> to vector<8x128xf32>
    %116 = arith.addf %114, %115 : vector<8x128xf32>
    %117 = arith.negf %116 : vector<8x128xf32>
    %118 = math.exp %117 : vector<8x128xf32>
    %cst_43 = arith.constant 1.000000e+00 : f32
    %119 = vector.broadcast %cst_43 : f32 to vector<8x128xf32>
    %120 = arith.addf %119, %118 : vector<8x128xf32>
    %121 = arith.divf %119, %120 : vector<8x128xf32>
    %122 = vector.extract_strided_slice %111 {offsets = [0, 128], sizes = [8, 128], strides = [1, 1]} : vector<8x384xf32> to vector<8x128xf32>
    %123 = vector.extract_strided_slice %113 {offsets = [0, 128], sizes = [8, 128], strides = [1, 1]} : vector<8x256xf32> to vector<8x128xf32>
    %124 = arith.addf %122, %123 : vector<8x128xf32>
    %125 = arith.negf %124 : vector<8x128xf32>
    %126 = math.exp %125 : vector<8x128xf32>
    %cst_44 = arith.constant 1.000000e+00 : f32
    %127 = vector.broadcast %cst_44 : f32 to vector<8x128xf32>
    %128 = arith.addf %127, %126 : vector<8x128xf32>
    %129 = arith.divf %127, %128 : vector<8x128xf32>
    %130 = vector.extract_strided_slice %111 {offsets = [0, 256], sizes = [8, 128], strides = [1, 1]} : vector<8x384xf32> to vector<8x128xf32>
    %131 = arith.mulf %104, %121 : vector<8x128xf32>
    %c0_45 = arith.constant 0 : index
    %c0_46 = arith.constant 0 : index
    %132 = vector.load %arg3[%c0_45, %c0_46] : memref<128x128xf32, #tpu.memory_space<vmem>>, vector<128x128xf32>
    %cst_47 = arith.constant dense<0.000000e+00> : vector<8x128xf32>
    %133 = tpu.matmul %131, %132, %cst_47 {dimension_numbers = #tpu.dot_dimension_numbers<[1], [0], [0], [1], [0, 0, 1, 1], [], []>} : vector<8x128xf32>, vector<128x128xf32>, vector<8x128xf32> -> vector<8x128xf32>
    %134 = arith.addf %130, %133 : vector<8x128xf32>
    %135 = math.tanh %134 : vector<8x128xf32>
    %136 = arith.mulf %129, %104 : vector<8x128xf32>
    %cst_48 = arith.constant 1.000000e+00 : f32
    %137 = vector.broadcast %cst_48 : f32 to vector<8x128xf32>
    %138 = arith.subf %137, %129 : vector<8x128xf32>
    %139 = arith.mulf %138, %135 : vector<8x128xf32>
    %140 = arith.addf %136, %139 : vector<8x128xf32>
    %141 = arith.index_cast %c3_i32 : i32 to index
    %c0_49 = arith.constant 0 : index
    %c0_50 = arith.constant 0 : index
    %142 = vector.load %arg4[%141, %c0_49, %c0_50] : memref<8x8x128xf32, #tpu.memory_space<vmem>>, vector<1x8x128xf32>
    %143 = vector.shape_cast %142 : vector<1x8x128xf32> to vector<8x128xf32>
    %144 = vector.shape_cast %140 : vector<8x128xf32> to vector<1x8x128xf32>
    tpu.vector_store %arg4[%141, %c0_49, %c0_50], %144 {strides = array<i32>} : memref<8x8x128xf32, #tpu.memory_space<vmem>>, vector<1x8x128xf32>,
    %c4_i32 = arith.constant 4 : i32
    %145 = arith.index_cast %c4_i32 : i32 to index
    %c0_51 = arith.constant 0 : index
    %c0_52 = arith.constant 0 : index
    %146 = vector.load %arg1[%145, %c0_51, %c0_52] : memref<8x8x384xf32, #tpu.memory_space<vmem>>, vector<1x8x384xf32>
    %147 = vector.shape_cast %146 : vector<1x8x384xf32> to vector<8x384xf32>
    %c0_53 = arith.constant 0 : index
    %c0_54 = arith.constant 0 : index
    %148 = vector.load %arg2[%c0_53, %c0_54] : memref<128x256xf32, #tpu.memory_space<vmem>>, vector<128x256xf32>
    %cst_55 = arith.constant dense<0.000000e+00> : vector<8x256xf32>
    %149 = tpu.matmul %140, %148, %cst_55 {dimension_numbers = #tpu.dot_dimension_numbers<[1], [0], [0], [1], [0, 0, 1, 1], [], []>} : vector<8x128xf32>, vector<128x256xf32>, vector<8x256xf32> -> vector<8x256xf32>
    %150 = vector.extract_strided_slice %147 {offsets = [0, 0], sizes = [8, 128], strides = [1, 1]} : vector<8x384xf32> to vector<8x128xf32>
    %151 = vector.extract_strided_slice %149 {offsets = [0, 0], sizes = [8, 128], strides = [1, 1]} : vector<8x256xf32> to vector<8x128xf32>
    %152 = arith.addf %150, %151 : vector<8x128xf32>
    %153 = arith.negf %152 : vector<8x128xf32>
    %154 = math.exp %153 : vector<8x128xf32>
    %cst_56 = arith.constant 1.000000e+00 : f32
    %155 = vector.broadcast %cst_56 : f32 to vector<8x128xf32>
    %156 = arith.addf %155, %154 : vector<8x128xf32>
    %157 = arith.divf %155, %156 : vector<8x128xf32>
    %158 = vector.extract_strided_slice %147 {offsets = [0, 128], sizes = [8, 128], strides = [1, 1]} : vector<8x384xf32> to vector<8x128xf32>
    %159 = vector.extract_strided_slice %149 {offsets = [0, 128], sizes = [8, 128], strides = [1, 1]} : vector<8x256xf32> to vector<8x128xf32>
    %160 = arith.addf %158, %159 : vector<8x128xf32>
    %161 = arith.negf %160 : vector<8x128xf32>
    %162 = math.exp %161 : vector<8x128xf32>
    %cst_57 = arith.constant 1.000000e+00 : f32
    %163 = vector.broadcast %cst_57 : f32 to vector<8x128xf32>
    %164 = arith.addf %163, %162 : vector<8x128xf32>
    %165 = arith.divf %163, %164 : vector<8x128xf32>
    %166 = vector.extract_strided_slice %147 {offsets = [0, 256], sizes = [8, 128], strides = [1, 1]} : vector<8x384xf32> to vector<8x128xf32>
    %167 = arith.mulf %140, %157 : vector<8x128xf32>
    %c0_58 = arith.constant 0 : index
    %c0_59 = arith.constant 0 : index
    %168 = vector.load %arg3[%c0_58, %c0_59] : memref<128x128xf32, #tpu.memory_space<vmem>>, vector<128x128xf32>
    %cst_60 = arith.constant dense<0.000000e+00> : vector<8x128xf32>
    %169 = tpu.matmul %167, %168, %cst_60 {dimension_numbers = #tpu.dot_dimension_numbers<[1], [0], [0], [1], [0, 0, 1, 1], [], []>} : vector<8x128xf32>, vector<128x128xf32>, vector<8x128xf32> -> vector<8x128xf32>
    %170 = arith.addf %166, %169 : vector<8x128xf32>
    %171 = math.tanh %170 : vector<8x128xf32>
    %172 = arith.mulf %165, %140 : vector<8x128xf32>
    %cst_61 = arith.constant 1.000000e+00 : f32
    %173 = vector.broadcast %cst_61 : f32 to vector<8x128xf32>
    %174 = arith.subf %173, %165 : vector<8x128xf32>
    %175 = arith.mulf %174, %171 : vector<8x128xf32>
    %176 = arith.addf %172, %175 : vector<8x128xf32>
    %177 = arith.index_cast %c4_i32 : i32 to index
    %c0_62 = arith.constant 0 : index
    %c0_63 = arith.constant 0 : index
    %178 = vector.load %arg4[%177, %c0_62, %c0_63] : memref<8x8x128xf32, #tpu.memory_space<vmem>>, vector<1x8x128xf32>
    %179 = vector.shape_cast %178 : vector<1x8x128xf32> to vector<8x128xf32>
    %180 = vector.shape_cast %176 : vector<8x128xf32> to vector<1x8x128xf32>
    tpu.vector_store %arg4[%177, %c0_62, %c0_63], %180 {strides = array<i32>} : memref<8x8x128xf32, #tpu.memory_space<vmem>>, vector<1x8x128xf32>,
    %c5_i32 = arith.constant 5 : i32
    %181 = arith.index_cast %c5_i32 : i32 to index
    %c0_64 = arith.constant 0 : index
    %c0_65 = arith.constant 0 : index
    %182 = vector.load %arg1[%181, %c0_64, %c0_65] : memref<8x8x384xf32, #tpu.memory_space<vmem>>, vector<1x8x384xf32>
    %183 = vector.shape_cast %182 : vector<1x8x384xf32> to vector<8x384xf32>
    %c0_66 = arith.constant 0 : index
    %c0_67 = arith.constant 0 : index
    %184 = vector.load %arg2[%c0_66, %c0_67] : memref<128x256xf32, #tpu.memory_space<vmem>>, vector<128x256xf32>
    %cst_68 = arith.constant dense<0.000000e+00> : vector<8x256xf32>
    %185 = tpu.matmul %176, %184, %cst_68 {dimension_numbers = #tpu.dot_dimension_numbers<[1], [0], [0], [1], [0, 0, 1, 1], [], []>} : vector<8x128xf32>, vector<128x256xf32>, vector<8x256xf32> -> vector<8x256xf32>
    %186 = vector.extract_strided_slice %183 {offsets = [0, 0], sizes = [8, 128], strides = [1, 1]} : vector<8x384xf32> to vector<8x128xf32>
    %187 = vector.extract_strided_slice %185 {offsets = [0, 0], sizes = [8, 128], strides = [1, 1]} : vector<8x256xf32> to vector<8x128xf32>
    %188 = arith.addf %186, %187 : vector<8x128xf32>
    %189 = arith.negf %188 : vector<8x128xf32>
    %190 = math.exp %189 : vector<8x128xf32>
    %cst_69 = arith.constant 1.000000e+00 : f32
    %191 = vector.broadcast %cst_69 : f32 to vector<8x128xf32>
    %192 = arith.addf %191, %190 : vector<8x128xf32>
    %193 = arith.divf %191, %192 : vector<8x128xf32>
    %194 = vector.extract_strided_slice %183 {offsets = [0, 128], sizes = [8, 128], strides = [1, 1]} : vector<8x384xf32> to vector<8x128xf32>
    %195 = vector.extract_strided_slice %185 {offsets = [0, 128], sizes = [8, 128], strides = [1, 1]} : vector<8x256xf32> to vector<8x128xf32>
    %196 = arith.addf %194, %195 : vector<8x128xf32>
    %197 = arith.negf %196 : vector<8x128xf32>
    %198 = math.exp %197 : vector<8x128xf32>
    %cst_70 = arith.constant 1.000000e+00 : f32
    %199 = vector.broadcast %cst_70 : f32 to vector<8x128xf32>
    %200 = arith.addf %199, %198 : vector<8x128xf32>
    %201 = arith.divf %199, %200 : vector<8x128xf32>
    %202 = vector.extract_strided_slice %183 {offsets = [0, 256], sizes = [8, 128], strides = [1, 1]} : vector<8x384xf32> to vector<8x128xf32>
    %203 = arith.mulf %176, %193 : vector<8x128xf32>
    %c0_71 = arith.constant 0 : index
    %c0_72 = arith.constant 0 : index
    %204 = vector.load %arg3[%c0_71, %c0_72] : memref<128x128xf32, #tpu.memory_space<vmem>>, vector<128x128xf32>
    %cst_73 = arith.constant dense<0.000000e+00> : vector<8x128xf32>
    %205 = tpu.matmul %203, %204, %cst_73 {dimension_numbers = #tpu.dot_dimension_numbers<[1], [0], [0], [1], [0, 0, 1, 1], [], []>} : vector<8x128xf32>, vector<128x128xf32>, vector<8x128xf32> -> vector<8x128xf32>
    %206 = arith.addf %202, %205 : vector<8x128xf32>
    %207 = math.tanh %206 : vector<8x128xf32>
    %208 = arith.mulf %201, %176 : vector<8x128xf32>
    %cst_74 = arith.constant 1.000000e+00 : f32
    %209 = vector.broadcast %cst_74 : f32 to vector<8x128xf32>
    %210 = arith.subf %209, %201 : vector<8x128xf32>
    %211 = arith.mulf %210, %207 : vector<8x128xf32>
    %212 = arith.addf %208, %211 : vector<8x128xf32>
    %213 = arith.index_cast %c5_i32 : i32 to index
    %c0_75 = arith.constant 0 : index
    %c0_76 = arith.constant 0 : index
    %214 = vector.load %arg4[%213, %c0_75, %c0_76] : memref<8x8x128xf32, #tpu.memory_space<vmem>>, vector<1x8x128xf32>
    %215 = vector.shape_cast %214 : vector<1x8x128xf32> to vector<8x128xf32>
    %216 = vector.shape_cast %212 : vector<8x128xf32> to vector<1x8x128xf32>
    tpu.vector_store %arg4[%213, %c0_75, %c0_76], %216 {strides = array<i32>} : memref<8x8x128xf32, #tpu.memory_space<vmem>>, vector<1x8x128xf32>,
    %c6_i32 = arith.constant 6 : i32
    %217 = arith.index_cast %c6_i32 : i32 to index
    %c0_77 = arith.constant 0 : index
    %c0_78 = arith.constant 0 : index
    %218 = vector.load %arg1[%217, %c0_77, %c0_78] : memref<8x8x384xf32, #tpu.memory_space<vmem>>, vector<1x8x384xf32>
    %219 = vector.shape_cast %218 : vector<1x8x384xf32> to vector<8x384xf32>
    %c0_79 = arith.constant 0 : index
    %c0_80 = arith.constant 0 : index
    %220 = vector.load %arg2[%c0_79, %c0_80] : memref<128x256xf32, #tpu.memory_space<vmem>>, vector<128x256xf32>
    %cst_81 = arith.constant dense<0.000000e+00> : vector<8x256xf32>
    %221 = tpu.matmul %212, %220, %cst_81 {dimension_numbers = #tpu.dot_dimension_numbers<[1], [0], [0], [1], [0, 0, 1, 1], [], []>} : vector<8x128xf32>, vector<128x256xf32>, vector<8x256xf32> -> vector<8x256xf32>
    %222 = vector.extract_strided_slice %219 {offsets = [0, 0], sizes = [8, 128], strides = [1, 1]} : vector<8x384xf32> to vector<8x128xf32>
    %223 = vector.extract_strided_slice %221 {offsets = [0, 0], sizes = [8, 128], strides = [1, 1]} : vector<8x256xf32> to vector<8x128xf32>
    %224 = arith.addf %222, %223 : vector<8x128xf32>
    %225 = arith.negf %224 : vector<8x128xf32>
    %226 = math.exp %225 : vector<8x128xf32>
    %cst_82 = arith.constant 1.000000e+00 : f32
    %227 = vector.broadcast %cst_82 : f32 to vector<8x128xf32>
    %228 = arith.addf %227, %226 : vector<8x128xf32>
    %229 = arith.divf %227, %228 : vector<8x128xf32>
    %230 = vector.extract_strided_slice %219 {offsets = [0, 128], sizes = [8, 128], strides = [1, 1]} : vector<8x384xf32> to vector<8x128xf32>
    %231 = vector.extract_strided_slice %221 {offsets = [0, 128], sizes = [8, 128], strides = [1, 1]} : vector<8x256xf32> to vector<8x128xf32>
    %232 = arith.addf %230, %231 : vector<8x128xf32>
    %233 = arith.negf %232 : vector<8x128xf32>
    %234 = math.exp %233 : vector<8x128xf32>
    %cst_83 = arith.constant 1.000000e+00 : f32
    %235 = vector.broadcast %cst_83 : f32 to vector<8x128xf32>
    %236 = arith.addf %235, %234 : vector<8x128xf32>
    %237 = arith.divf %235, %236 : vector<8x128xf32>
    %238 = vector.extract_strided_slice %219 {offsets = [0, 256], sizes = [8, 128], strides = [1, 1]} : vector<8x384xf32> to vector<8x128xf32>
    %239 = arith.mulf %212, %229 : vector<8x128xf32>
    %c0_84 = arith.constant 0 : index
    %c0_85 = arith.constant 0 : index
    %240 = vector.load %arg3[%c0_84, %c0_85] : memref<128x128xf32, #tpu.memory_space<vmem>>, vector<128x128xf32>
    %cst_86 = arith.constant dense<0.000000e+00> : vector<8x128xf32>
    %241 = tpu.matmul %239, %240, %cst_86 {dimension_numbers = #tpu.dot_dimension_numbers<[1], [0], [0], [1], [0, 0, 1, 1], [], []>} : vector<8x128xf32>, vector<128x128xf32>, vector<8x128xf32> -> vector<8x128xf32>
    %242 = arith.addf %238, %241 : vector<8x128xf32>
    %243 = math.tanh %242 : vector<8x128xf32>
    %244 = arith.mulf %237, %212 : vector<8x128xf32>
    %cst_87 = arith.constant 1.000000e+00 : f32
    %245 = vector.broadcast %cst_87 : f32 to vector<8x128xf32>
    %246 = arith.subf %245, %237 : vector<8x128xf32>
    %247 = arith.mulf %246, %243 : vector<8x128xf32>
    %248 = arith.addf %244, %247 : vector<8x128xf32>
    %249 = arith.index_cast %c6_i32 : i32 to index
    %c0_88 = arith.constant 0 : index
    %c0_89 = arith.constant 0 : index
    %250 = vector.load %arg4[%249, %c0_88, %c0_89] : memref<8x8x128xf32, #tpu.memory_space<vmem>>, vector<1x8x128xf32>
    %251 = vector.shape_cast %250 : vector<1x8x128xf32> to vector<8x128xf32>
    %252 = vector.shape_cast %248 : vector<8x128xf32> to vector<1x8x128xf32>
    tpu.vector_store %arg4[%249, %c0_88, %c0_89], %252 {strides = array<i32>} : memref<8x8x128xf32, #tpu.memory_space<vmem>>, vector<1x8x128xf32>,
    %c7_i32 = arith.constant 7 : i32
    %253 = arith.index_cast %c7_i32 : i32 to index
    %c0_90 = arith.constant 0 : index
    %c0_91 = arith.constant 0 : index
    %254 = vector.load %arg1[%253, %c0_90, %c0_91] : memref<8x8x384xf32, #tpu.memory_space<vmem>>, vector<1x8x384xf32>
    %255 = vector.shape_cast %254 : vector<1x8x384xf32> to vector<8x384xf32>
    %c0_92 = arith.constant 0 : index
    %c0_93 = arith.constant 0 : index
    %256 = vector.load %arg2[%c0_92, %c0_93] : memref<128x256xf32, #tpu.memory_space<vmem>>, vector<128x256xf32>
    %cst_94 = arith.constant dense<0.000000e+00> : vector<8x256xf32>
    %257 = tpu.matmul %248, %256, %cst_94 {dimension_numbers = #tpu.dot_dimension_numbers<[1], [0], [0], [1], [0, 0, 1, 1], [], []>} : vector<8x128xf32>, vector<128x256xf32>, vector<8x256xf32> -> vector<8x256xf32>
    %258 = vector.extract_strided_slice %255 {offsets = [0, 0], sizes = [8, 128], strides = [1, 1]} : vector<8x384xf32> to vector<8x128xf32>
    %259 = vector.extract_strided_slice %257 {offsets = [0, 0], sizes = [8, 128], strides = [1, 1]} : vector<8x256xf32> to vector<8x128xf32>
    %260 = arith.addf %258, %259 : vector<8x128xf32>
    %261 = arith.negf %260 : vector<8x128xf32>
    %262 = math.exp %261 : vector<8x128xf32>
    %cst_95 = arith.constant 1.000000e+00 : f32
    %263 = vector.broadcast %cst_95 : f32 to vector<8x128xf32>
    %264 = arith.addf %263, %262 : vector<8x128xf32>
    %265 = arith.divf %263, %264 : vector<8x128xf32>
    %266 = vector.extract_strided_slice %255 {offsets = [0, 128], sizes = [8, 128], strides = [1, 1]} : vector<8x384xf32> to vector<8x128xf32>
    %267 = vector.extract_strided_slice %257 {offsets = [0, 128], sizes = [8, 128], strides = [1, 1]} : vector<8x256xf32> to vector<8x128xf32>
    %268 = arith.addf %266, %267 : vector<8x128xf32>
    %269 = arith.negf %268 : vector<8x128xf32>
    %270 = math.exp %269 : vector<8x128xf32>
    %cst_96 = arith.constant 1.000000e+00 : f32
    %271 = vector.broadcast %cst_96 : f32 to vector<8x128xf32>
    %272 = arith.addf %271, %270 : vector<8x128xf32>
    %273 = arith.divf %271, %272 : vector<8x128xf32>
    %274 = vector.extract_strided_slice %255 {offsets = [0, 256], sizes = [8, 128], strides = [1, 1]} : vector<8x384xf32> to vector<8x128xf32>
    %275 = arith.mulf %248, %265 : vector<8x128xf32>
    %c0_97 = arith.constant 0 : index
    %c0_98 = arith.constant 0 : index
    %276 = vector.load %arg3[%c0_97, %c0_98] : memref<128x128xf32, #tpu.memory_space<vmem>>, vector<128x128xf32>
    %cst_99 = arith.constant dense<0.000000e+00> : vector<8x128xf32>
    %277 = tpu.matmul %275, %276, %cst_99 {dimension_numbers = #tpu.dot_dimension_numbers<[1], [0], [0], [1], [0, 0, 1, 1], [], []>} : vector<8x128xf32>, vector<128x128xf32>, vector<8x128xf32> -> vector<8x128xf32>
    %278 = arith.addf %274, %277 : vector<8x128xf32>
    %279 = math.tanh %278 : vector<8x128xf32>
    %280 = arith.mulf %273, %248 : vector<8x128xf32>
    %cst_100 = arith.constant 1.000000e+00 : f32
    %281 = vector.broadcast %cst_100 : f32 to vector<8x128xf32>
    %282 = arith.subf %281, %273 : vector<8x128xf32>
    %283 = arith.mulf %282, %279 : vector<8x128xf32>
    %284 = arith.addf %280, %283 : vector<8x128xf32>
    %285 = arith.index_cast %c7_i32 : i32 to index
    %c0_101 = arith.constant 0 : index
    %c0_102 = arith.constant 0 : index
    %286 = vector.load %arg4[%285, %c0_101, %c0_102] : memref<8x8x128xf32, #tpu.memory_space<vmem>>, vector<1x8x128xf32>
    %287 = vector.shape_cast %286 : vector<1x8x128xf32> to vector<8x128xf32>
    %288 = vector.shape_cast %284 : vector<8x128xf32> to vector<1x8x128xf32>
    tpu.vector_store %arg4[%285, %c0_101, %c0_102], %288 {strides = array<i32>} : memref<8x8x128xf32, #tpu.memory_space<vmem>>, vector<1x8x128xf32>,
    %c8_i32 = arith.constant 8 : i32
    %c0_103 = arith.constant 0 : index
    %c0_104 = arith.constant 0 : index
    %289 = vector.load %arg5[%c0_103, %c0_104] : memref<8x128xf32, #tpu.memory_space<vmem>>, vector<8x128xf32>
    tpu.vector_store %arg5[%c0_103, %c0_104], %284 {strides = array<i32>} : memref<8x128xf32, #tpu.memory_space<vmem>>, vector<8x128xf32>,
    return
  }
  func.func @transform_0(%arg0: i32) -> (i32, i32, i32) {
    %c0_i32 = arith.constant 0 : i32
    %c0_i32_0 = arith.constant 0 : i32
    %c0_i32_1 = arith.constant 0 : i32
    %c0_i32_2 = arith.constant 0 : i32
    return %c0_i32, %c0_i32_0, %c0_i32_1 : i32, i32, i32
  }
  func.func @transform_1(%arg0: i32) -> (i32, i32) {
    %c0_i32 = arith.constant 0 : i32
    %c0_i32_0 = arith.constant 0 : i32
    %c0_i32_1 = arith.constant 0 : i32
    return %c0_i32, %c0_i32_0 : i32, i32
  }
  func.func @transform_2(%arg0: i32) -> (i32, i32) {
    %c0_i32 = arith.constant 0 : i32
    %c0_i32_0 = arith.constant 0 : i32
    %c0_i32_1 = arith.constant 0 : i32
    return %c0_i32, %c0_i32_0 : i32, i32
  }
  func.func @transform_3(%arg0: i32) -> (i32, i32, i32) {
    %c0_i32 = arith.constant 0 : i32
    %c0_i32_0 = arith.constant 0 : i32
    %c0_i32_1 = arith.constant 0 : i32
    %c0_i32_2 = arith.constant 0 : i32
    return %c0_i32, %c0_i32_0, %c0_i32_1 : i32, i32, i32
  }
  func.func @transform_4(%arg0: i32) -> (i32, i32) {
    %c0_i32 = arith.constant 0 : i32
    %c0_i32_0 = arith.constant 0 : i32
    %c0_i32_1 = arith.constant 0 : i32
    return %c0_i32, %c0_i32_0 : i32, i32
  }
}

</mosaic_0001>

<bundles_post_ra>
// kernel: tpu_custom_call.1
= control target key start
LH: loop header
LB: loop body
LE: loop exit
PB: predicated region body
PF: predicated region fallthrough
CT: control target
= control target key end

     0   :  { %10 = vsyncpa [#allocation3], 0  ;;  %s2293_s0 = inlined_call_operand.hbm [shape: f32[8,8,384], index: 0, kind: input, shape index: {}]   ;;  %s2294_s1 = inlined_call_operand.hbm [shape: f32[128,256], index: 1, kind: input, shape index: {}]   ;;  %s2295_s2 = inlined_call_operand.hbm [shape: f32[128,128], index: 2, kind: input, shape index: {}]   ;;  %s2296_s3 = inlined_call_operand.hbm [shape: f32[8,8,128], index: 3, kind: output, shape index: {0}]   ;;  %s2297_s4 = inlined_call_operand.hbm [shape: f32[8,128], index: 4, kind: output, shape index: {1}]  }
   0x1   :  { %11 = vsyncpa [#allocation6], 0 }
   0x2   :  { %12 = vsyncpa [#allocation4], 0  ;;  %s31_s17 = sshll.u32 %s2294_s1, 4  ;;  %s32_s17 = int_to_ptr.hbm [resolvable:$true] %s31_s17 }
   0x3   :  { %13 = vsyncpa [#allocation10], 0  ;;  %s1624_s18 = smov [#allocation5]   ;;  %s18_s22 = sshll.u32 %s2293_s0, 4  ;;  %s19_s22 = int_to_ptr.hbm [resolvable:$true] %s18_s22 }
   0x4   :  { %s33_s19 = sshll.u32 %s1624_s18, 4  ;;  %s1625_s23 = smov 256   ;;  %s34_s19 = int_to_ptr.vmem [resolvable:$true] %s33_s19 }
   0x5   :  { %s1626_s24 = smov 16   ;;  %s1627_s25 = smov [#allocation2]  }
   0x6   :  { %39 = dma.hbm_to_vmem [thread:$0]  %s32_s17, 4096, %s34_s19, [#allocation6], %s1625_s23, %s1625_s23, %s1626_s24  }
   0x7   :  { %s20_s26 = sshll.u32 %s1627_s25, 4  ;;  %s1628_s27 = smov 384   ;;  %s21_s26 = int_to_ptr.vmem [resolvable:$true] %s20_s26 }
   0x8   :  { %s1629_s28 = smov 24   ;;  %s44_s30 = sshll.u32 %s2295_s2, 4  ;;  %s45_s30 = int_to_ptr.hbm [resolvable:$true] %s44_s30 }
   0x9   :  { %26 = dma.hbm_to_vmem [thread:$0]  %s19_s22, 3072, %s21_s26, [#allocation3], %s1628_s27, %s1628_s27, %s1629_s28  }
   0xa   :  { %s1630_s5 = smov [#allocation7]   ;;  %s1631_s7 = smov 128  }
   0xb   :  { %s46_s6 = sshll.u32 %s1630_s5, 4  ;;  %s1632_s0 = smov 8   ;;  %s47_s6 = int_to_ptr.vmem [resolvable:$true] %s46_s6 }
   0xc   :  { %52 = dma.hbm_to_vmem [thread:$0]  %s45_s30, 2048, %s47_s6, [#allocation6], %s1631_s7, %s1631_s7, %s1632_s0  }
   0xd   :  { %1616 = dma.done.wait [#allocation3], 3072  }
   0xe   :  { %1617 = vsyncadd [#allocation3], 4294964224 }
   0xf   :  { %1618 = dma.done.wait [#allocation6], 6144  }
  0x10   :  { %1619 = vsyncadd [#allocation6], 4294961152  ;;  %v1673_v0 = vld [vmem:[#allocation5 + $0xf0] sm:$0xff]  ;;  %v1675_v1 = vld [vmem:[#allocation5 + $0xe0] sm:$0xff]  ;;  %v1633_v30 = vmov 0.0   ;;  %s1634_s2 = smov [#allocation8]  }
  0x11   :  { %100 = vmatpush.msra.mxu0 %v1673_v0  ;;  %260 = vmatpush.msra.mxu3 %v1673_v0  ;;  %v1679_v2 = vld [vmem:[#allocation5 + $0xd0] sm:$0xff]  ;;  %v1683_v3 = vld [vmem:[#allocation5 + $0xc0] sm:$0xff]  ;;  %v1686_v4 = vld [vmem:[#allocation5 + $0xf8] sm:$0xff]  ;;  %s1356_s8 = sshll.u32 %s1634_s2, 4  ;;  %s1358_s11 = sshll.u32 %s2296_s3, 4  ;;  %s1357_s8 = int_to_ptr.vmem [resolvable:$true] %s1356_s8  ;;  %s1359_s11 = int_to_ptr.hbm [resolvable:$true] %s1358_s11 }
  0x12   :  { %v1688_v5 = vld [vmem:[#allocation5 + $0xe8] sm:$0xff]  ;;  %v1691_v6 = vld [vmem:[#allocation5 + $0xb0] sm:$0xff]  ;;  %120 = vmatpush.msra.mxu1 %v1686_v4  ;;  %v1695_v7 = vld [vmem:[#allocation5 + $0xd8] sm:$0xff]  ;;  %s1635_s12 = smov [#allocation9]   ;;  %s1372_s16 = sshll.u32 %s2297_s4, 4  ;;  %s1373_s16 = int_to_ptr.hbm [resolvable:$true] %s1372_s16 }
  0x13   :  { %101 = vmatpush.msra.mxu0 %v1675_v1  ;;  %261 = vmatpush.msra.mxu3 %v1675_v1  ;;  %v1698_v8 = vld [vmem:[#allocation5 + $0xa0] sm:$0xff]  ;;  %v1702_v9 = vld [vmem:[#allocation5 + $0xc8] sm:$0xff]  ;;  %v1705_v10 = vld [vmem:[#allocation5 + $0x90] sm:$0xff]  ;;  %s1370_s13 = sshll.u32 %s1635_s12, 4  ;;  %s1371_s13 = int_to_ptr.vmem [resolvable:$true] %s1370_s13 }
  0x14   :  { %121 = vmatpush.msra.mxu1 %v1688_v5  ;;  %v1709_v11 = vld [vmem:[#allocation5 + $0xb8] sm:$0xff]  ;;  %v1712_v12 = vld [vmem:[#allocation5 + $0x80] sm:$0xff]  ;;  %v1716_v13 = vld [vmem:[#allocation5 + $0xa8] sm:$0xff] }
  0x15   :  { %102 = vmatpush.msra.mxu0 %v1679_v2  ;;  %262 = vmatpush.msra.mxu3 %v1679_v2  ;;  %v1719_v14 = vld [vmem:[#allocation5 + $0x70] sm:$0xff]  ;;  %v1723_v15 = vld [vmem:[#allocation5 + $0x98] sm:$0xff]  ;;  %v1726_v16 = vld [vmem:[#allocation5 + $0x60] sm:$0xff] }
  0x16   :  { %122 = vmatpush.msra.mxu1 %v1695_v7  ;;  %v1730_v17 = vld [vmem:[#allocation5 + $0x88] sm:$0xff]  ;;  %v1733_v18 = vld [vmem:[#allocation5 + $0x50] sm:$0xff]  ;;  %v1737_v19 = vld [vmem:[#allocation5 + $0x78] sm:$0xff] }
  0x17   :  { %103 = vmatpush.msra.mxu0 %v1683_v3  ;;  %263 = vmatpush.msra.mxu3 %v1683_v3  ;;  %v1740_v20 = vld [vmem:[#allocation5 + $0x40] sm:$0xff]  ;;  %v1744_v21 = vld [vmem:[#allocation5 + $0x68] sm:$0xff]  ;;  %v1747_v22 = vld [vmem:[#allocation5 + $0x30] sm:$0xff] }
  0x18   :  { %123 = vmatpush.msra.mxu1 %v1702_v9  ;;  %v1751_v23 = vld [vmem:[#allocation5 + $0x58] sm:$0xff]  ;;  %v1754_v24 = vld [vmem:[#allocation5 + $0x20] sm:$0xff]  ;;  %v1758_v25 = vld [vmem:[#allocation5 + $0x48] sm:$0xff] }
  0x19   :  { %104 = vmatpush.msra.mxu0 %v1691_v6  ;;  %264 = vmatpush.msra.mxu3 %v1691_v6  ;;  %v1761_v26 = vld [vmem:[#allocation5 + $0x10] sm:$0xff]  ;;  %v1765_v27 = vld [vmem:[#allocation5 + $0x38] sm:$0xff]  ;;  %v1768_v28 = vld [vmem:[#allocation5] sm:$0xff] }
  0x1a   :  { %124 = vmatpush.msra.mxu1 %v1709_v11  ;;  %v1772_v29 = vld [vmem:[#allocation5 + $0x28] sm:$0xff]  ;;  %v1807_v31 = vld [vmem:[#allocation5 + $0x18] sm:$0xff]  ;;  %v1818_v34 = vld [vmem:[#allocation7 + $0x70] sm:$0xff] }
  0x1b   :  { %105 = vmatpush.msra.mxu0 %v1698_v8  ;;  %265 = vmatpush.msra.mxu3 %v1698_v8  ;;  %v1811_v32 = vld [vmem:[#allocation5 + $0x8] sm:$0xff]  ;;  %v1813_v33 = vld [vmem:[#allocation7 + $0x78] sm:$0xff]  ;;  %v1829_v36 = vld [vmem:[#allocation7 + $0x60] sm:$0xff] }
  0x1c   :  { %125 = vmatpush.msra.mxu1 %v1716_v13  ;;  %197 = vmatpush.msra.mxu2 %v1813_v33  ;;  %v1823_v35 = vld [vmem:[#allocation7 + $0x68] sm:$0xff]  ;;  %v1834_v37 = vld [vmem:[#allocation7 + $0x58] sm:$0xff]  ;;  %v1839_v38 = vld [vmem:[#allocation7 + $0x50] sm:$0xff] }
  0x1d   :  { %106 = vmatpush.msra.mxu0 %v1705_v10  ;;  %266 = vmatpush.msra.mxu3 %v1705_v10  ;;  %v1844_v39 = vld [vmem:[#allocation7 + $0x48] sm:$0xff]  ;;  %v1848_v40 = vld [vmem:[#allocation7 + $0x40] sm:$0xff]  ;;  %v1851_v41 = vld [vmem:[#allocation7 + $0x38] sm:$0xff] }
  0x1e   :  { %126 = vmatpush.msra.mxu1 %v1723_v15  ;;  %198 = vmatpush.msra.mxu2 %v1818_v34  ;;  %v1856_v42 = vld [vmem:[#allocation7 + $0x30] sm:$0xff]  ;;  %v1861_v43 = vld [vmem:[#allocation7 + $0x28] sm:$0xff]  ;;  %v1866_v44 = vld [vmem:[#allocation7 + $0x20] sm:$0xff] }
  0x1f   :  { %107 = vmatpush.msra.mxu0 %v1712_v12  ;;  %267 = vmatpush.msra.mxu3 %v1712_v12  ;;  %v1871_v45 = vld [vmem:[#allocation7 + $0x18] sm:$0xff]  ;;  %v1876_v46 = vld [vmem:[#allocation7 + $0x10] sm:$0xff]  ;;  %v1881_v47 = vld [vmem:[#allocation7 + $0x8] sm:$0xff] }
  0x20   :  { %127 = vmatpush.msra.mxu1 %v1730_v17  ;;  %199 = vmatpush.msra.mxu2 %v1823_v35  ;;  %v1886_v48 = vld [vmem:[#allocation7] sm:$0xff] }
  0x21   :  { %108 = vmatpush.msra.mxu0 %v1719_v14  ;;  %268 = vmatpush.msra.mxu3 %v1719_v14  ;;  %v65_v49 = vld [vmem:[#allocation2] sm:$0xff] }
  0x22   :  { %128 = vmatpush.msra.mxu1 %v1737_v19  ;;  %200 = vmatpush.msra.mxu2 %v1829_v36 }
  0x23   :  { %109 = vmatpush.msra.mxu0 %v1726_v16  ;;  %269 = vmatpush.msra.mxu3 %v1726_v16 }
  0x24   :  { %129 = vmatpush.msra.mxu1 %v1744_v21  ;;  %201 = vmatpush.msra.mxu2 %v1834_v37 }
  0x25   :  { %110 = vmatpush.msra.mxu0 %v1733_v18  ;;  %270 = vmatpush.msra.mxu3 %v1733_v18 }
  0x26   :  { %130 = vmatpush.msra.mxu1 %v1751_v23  ;;  %202 = vmatpush.msra.mxu2 %v1839_v38 }
  0x27   :  { %111 = vmatpush.msra.mxu0 %v1740_v20  ;;  %271 = vmatpush.msra.mxu3 %v1740_v20 }
  0x28   :  { %131 = vmatpush.msra.mxu1 %v1758_v25  ;;  %203 = vmatpush.msra.mxu2 %v1844_v39 }
  0x29   :  { %112 = vmatpush.msra.mxu0 %v1747_v22  ;;  %272 = vmatpush.msra.mxu3 %v1747_v22 }
  0x2a   :  { %132 = vmatpush.msra.mxu1 %v1765_v27  ;;  %204 = vmatpush.msra.mxu2 %v1848_v40 }
  0x2b   :  { %113 = vmatpush.msra.mxu0 %v1754_v24  ;;  %273 = vmatpush.msra.mxu3 %v1754_v24 }
  0x2c   :  { %133 = vmatpush.msra.mxu1 %v1772_v29  ;;  %205 = vmatpush.msra.mxu2 %v1851_v41 }
  0x2d   :  { %114 = vmatpush.msra.mxu0 %v1761_v26  ;;  %274 = vmatpush.msra.mxu3 %v1761_v26 }
  0x2e   :  { %134 = vmatpush.msra.mxu1 %v1807_v31  ;;  %206 = vmatpush.msra.mxu2 %v1856_v42 }
  0x2f   :  { %115 = vmatpush.msra.mxu0 %v1768_v28  ;;  %275 = vmatpush.msra.mxu3 %v1768_v28 }
  0x30   :  { %116 = vmatmul.f32.vlgmr.msra.gmra.mxu0 %v1633_v30  ;;  %135 = vmatpush.msra.mxu1 %v1811_v32 }
  0x31   :  { %280 = vmatpush.msrb.mxu0 %v1686_v4  ;;  %441 = vmatpush.msrb.mxu3 %v1686_v4 }
  0x32   :  { %136 = vmatmul.f32.vlgmr.msra.gmra.mxu1 %v1633_v30  ;;  %207 = vmatpush.msra.mxu2 %v1861_v43 }
  0x33   :  { %281 = vmatpush.msrb.mxu0 %v1688_v5  ;;  %442 = vmatpush.msrb.mxu3 %v1688_v5 }
  0x34   :  { %357 = vmatpush.msrb.mxu1 %v1813_v33  ;;  %208 = vmatpush.msra.mxu2 %v1866_v44 }
  0x35   :  { %282 = vmatpush.msrb.mxu0 %v1695_v7  ;;  %443 = vmatpush.msrb.mxu3 %v1695_v7 }
  0x36   :  { %358 = vmatpush.msrb.mxu1 %v1818_v34  ;;  %209 = vmatpush.msra.mxu2 %v1871_v45 }
  0x37   :  { %283 = vmatpush.msrb.mxu0 %v1702_v9  ;;  %444 = vmatpush.msrb.mxu3 %v1702_v9 }
  0x38   :  { %359 = vmatpush.msrb.mxu1 %v1823_v35  ;;  %210 = vmatpush.msra.mxu2 %v1876_v46 }
  0x39   :  { %284 = vmatpush.msrb.mxu0 %v1709_v11  ;;  %445 = vmatpush.msrb.mxu3 %v1709_v11 }
  0x3a   :  { %360 = vmatpush.msrb.mxu1 %v1829_v36  ;;  %211 = vmatpush.msra.mxu2 %v1881_v47 }
  0x3b   :  { %285 = vmatpush.msrb.mxu0 %v1716_v13  ;;  %446 = vmatpush.msrb.mxu3 %v1716_v13 }
  0x3c   :  { %361 = vmatpush.msrb.mxu1 %v1834_v37  ;;  %212 = vmatpush.msra.mxu2 %v1886_v48 }
  0x3d   :  { %286 = vmatpush.msrb.mxu0 %v1723_v15  ;;  %447 = vmatpush.msrb.mxu3 %v1723_v15 }
  0x3e   :  { %362 = vmatpush.msrb.mxu1 %v1839_v38  ;;  %421 = vmatpush.msrb.mxu2 %v1673_v0 }
  0x3f   :  { %287 = vmatpush.msrb.mxu0 %v1730_v17  ;;  %448 = vmatpush.msrb.mxu3 %v1730_v17 }
  0x40   :  { %363 = vmatpush.msrb.mxu1 %v1844_v39  ;;  %422 = vmatpush.msrb.mxu2 %v1675_v1 }
  0x41   :  { %288 = vmatpush.msrb.mxu0 %v1737_v19  ;;  %449 = vmatpush.msrb.mxu3 %v1737_v19 }
  0x42   :  { %364 = vmatpush.msrb.mxu1 %v1848_v40  ;;  %423 = vmatpush.msrb.mxu2 %v1679_v2 }
  0x43   :  { %289 = vmatpush.msrb.mxu0 %v1744_v21  ;;  %450 = vmatpush.msrb.mxu3 %v1744_v21 }
  0x44   :  { %365 = vmatpush.msrb.mxu1 %v1851_v41  ;;  %424 = vmatpush.msrb.mxu2 %v1683_v3 }
  0x45   :  { %290 = vmatpush.msrb.mxu0 %v1751_v23  ;;  %451 = vmatpush.msrb.mxu3 %v1751_v23 }
  0x46   :  { %366 = vmatpush.msrb.mxu1 %v1856_v42  ;;  %425 = vmatpush.msrb.mxu2 %v1691_v6 }
  0x47   :  { %291 = vmatpush.msrb.mxu0 %v1758_v25  ;;  %452 = vmatpush.msrb.mxu3 %v1758_v25 }
  0x48   :  { %367 = vmatpush.msrb.mxu1 %v1861_v43  ;;  %426 = vmatpush.msrb.mxu2 %v1698_v8 }
  0x49   :  { %292 = vmatpush.msrb.mxu0 %v1765_v27  ;;  %453 = vmatpush.msrb.mxu3 %v1765_v27 }
  0x4a   :  { %368 = vmatpush.msrb.mxu1 %v1866_v44  ;;  %427 = vmatpush.msrb.mxu2 %v1705_v10 }
  0x4b   :  { %293 = vmatpush.msrb.mxu0 %v1772_v29  ;;  %454 = vmatpush.msrb.mxu3 %v1772_v29 }
  0x4c   :  { %369 = vmatpush.msrb.mxu1 %v1871_v45  ;;  %428 = vmatpush.msrb.mxu2 %v1712_v12 }
  0x4d   :  { %294 = vmatpush.msrb.mxu0 %v1807_v31  ;;  %455 = vmatpush.msrb.mxu3 %v1807_v31 }
  0x4e   :  { %370 = vmatpush.msrb.mxu1 %v1876_v46  ;;  %429 = vmatpush.msrb.mxu2 %v1719_v14 }
  0x4f   :  { %295 = vmatpush.msrb.mxu0 %v1811_v32  ;;  %456 = vmatpush.msrb.mxu3 %v1811_v32 }
  0x50   :  { %371 = vmatpush.msrb.mxu1 %v1881_v47  ;;  %430 = vmatpush.msrb.mxu2 %v1726_v16 }
  0x51   :  { %518 = vmatpush.msra.mxu0 %v1813_v33 }
  0x52   :  { %372 = vmatpush.msrb.mxu1 %v1886_v48  ;;  %431 = vmatpush.msrb.mxu2 %v1733_v18 }
  0x53   :  { %519 = vmatpush.msra.mxu0 %v1818_v34 }
  0x54   :  { %582 = vmatpush.msra.mxu1 %v1673_v0  ;;  %432 = vmatpush.msrb.mxu2 %v1740_v20 }
  0x55   :  { %520 = vmatpush.msra.mxu0 %v1823_v35 }
  0x56   :  { %583 = vmatpush.msra.mxu1 %v1675_v1  ;;  %433 = vmatpush.msrb.mxu2 %v1747_v22 }
  0x57   :  { %521 = vmatpush.msra.mxu0 %v1829_v36 }
  0x58   :  { %584 = vmatpush.msra.mxu1 %v1679_v2  ;;  %434 = vmatpush.msrb.mxu2 %v1754_v24  ;;  %v66_v2 = vld [vmem:[#allocation2 + $0x8] sm:$0xff] }
  0x59   :  { %522 = vmatpush.msra.mxu0 %v1834_v37 }
  0x5a   :  { %585 = vmatpush.msra.mxu1 %v1683_v3  ;;  %435 = vmatpush.msrb.mxu2 %v1761_v26 }
  0x5b   :  { %523 = vmatpush.msra.mxu0 %v1839_v38 }
  0x5c   :  { %586 = vmatpush.msra.mxu1 %v1691_v6  ;;  %436 = vmatpush.msrb.mxu2 %v1768_v28 }
  0x5d   :  { %524 = vmatpush.msra.mxu0 %v1844_v39 }
  0x5e   :  { %587 = vmatpush.msra.mxu1 %v1698_v8 }
  0x5f   :  { %525 = vmatpush.msra.mxu0 %v1848_v40 }
  0x60   :  { %588 = vmatpush.msra.mxu1 %v1705_v10 }
  0x61   :  { %526 = vmatpush.msra.mxu0 %v1851_v41 }
  0x62   :  { %589 = vmatpush.msra.mxu1 %v1712_v12 }
  0x63   :  { %527 = vmatpush.msra.mxu0 %v1856_v42 }
  0x64   :  { %590 = vmatpush.msra.mxu1 %v1719_v14 }
  0x65   :  { %528 = vmatpush.msra.mxu0 %v1861_v43 }
  0x66   :  { %591 = vmatpush.msra.mxu1 %v1726_v16 }
  0x67   :  { %529 = vmatpush.msra.mxu0 %v1866_v44 }
  0x68   :  { %592 = vmatpush.msra.mxu1 %v1733_v18 }
  0x69   :  { %530 = vmatpush.msra.mxu0 %v1871_v45 }
  0x6a   :  { %593 = vmatpush.msra.mxu1 %v1740_v20 }
  0x6b   :  { %531 = vmatpush.msra.mxu0 %v1876_v46 }
  0x6c   :  { %594 = vmatpush.msra.mxu1 %v1747_v22 }
  0x6d   :  { %532 = vmatpush.msra.mxu0 %v1881_v47 }
  0x6e   :  { %595 = vmatpush.msra.mxu1 %v1754_v24 }
  0x6f   :  { %533 = vmatpush.msra.mxu0 %v1886_v48 }
  0x70   :  { %596 = vmatpush.msra.mxu1 %v1761_v26  ;;  %v225_v26 = vld [vmem:[#allocation2 + $0x18] sm:$0xff] }
  0x72   :  { %597 = vmatpush.msra.mxu1 %v1768_v28 }
  0xad   :  { %v117_v50 = vpop.f32.mrf.mxu0 }
  0xae   :  { %v140_v51 = vadd.f32 %v117_v50, %v65_v49 }
  0xaf   :  { %v137_v3 = vpop.f32.mrf.mxu1 }
  0xb0   :  { %v1388_v52 = vmul.f32 -1.442695, %v140_v51 }
  0xb2   :  { %1416 = vpow2.f32 %v1388_v52 }
  0xb8   :  { %v1417_v53 = vpop.eup %1416 }
  0xb9   :  { %v144_v54 = vadd.f32 1.0, %v1417_v53  ;;  %v227_v53 = vld [vmem:[#allocation2 + $0x28] sm:$0xff] }
  0xbb   :  { %1418 = vrcp.f32 %v144_v54  ;;  %v156_v58 = vand.u32 2147483648, %v144_v54  ;;  %v154_v60 = vand.u32 2147483647, %v144_v54  ;;  %vm150_vm1 = vweird.f32 %v144_v54 }
  0xbd   :  { %v157_v62 = vor.u32 1.1754944e-38, %v156_v58  ;;  %vm155_vm3 = vcmp.eq.f32.partialorder %v154_v60, 8.507059e+37 }
  0xc1   :  { %v1419_v55 = vpop.eup %1418 }
  0xc2   :  { %v146_v56 = vmul.f32 %v1419_v55, %v144_v54  ;;  %vm151_vm0 = vweird.f32 %v1419_v55 }
  0xc3   :  { %vm152_vm2 = vmor %vm150_vm1, %vm151_vm0 }
  0xc4   :  { %v147_v57 = vsub.f32 1.0, %v146_v56 }
  0xc6   :  { %v148_v59 = vmul.f32 %v1419_v55, %v147_v57 }
  0xc8   :  { %v149_v61 = vadd.f32 %v1419_v55, %v148_v59 }
  0xca   :  { %v153_v63 = vsel %vm152_vm2, %v1419_v55, %v149_v61 }
  0xcb   :  { %v158_v0 = vsel %vm155_vm3, %v157_v62, %v153_v63 }
  0xcc   :  { %v180_v1 = vmul.f32 0.0, %v158_v0 }
  0xce   :  { %213 = vmatmul.f32.vlgmr.msra.gmra.mxu2 %v180_v1 }
  0xcf   :  { %602 = vmatpush.msra.mxu2 %v1686_v4  ;;  %v160_v4 = vadd.f32 %v137_v3, %v66_v2  ;;  %v386_v3 = vld [vmem:[#allocation2 + $0x30] sm:$0xff] }
  0xd1   :  { %603 = vmatpush.msra.mxu2 %v1688_v5  ;;  %v1389_v5 = vmul.f32 -1.442695, %v160_v4 }
  0xd3   :  { %604 = vmatpush.msra.mxu2 %v1695_v7  ;;  %1420 = vpow2.f32 %v1389_v5 }
  0xd5   :  { %605 = vmatpush.msra.mxu2 %v1702_v9 }
  0xd7   :  { %606 = vmatpush.msra.mxu2 %v1709_v11 }
  0xd9   :  { %607 = vmatpush.msra.mxu2 %v1716_v13  ;;  %v1421_v6 = vpop.eup %1420  ;;  %v67_v13 = vld [vmem:[#allocation2 + $0x10] sm:$0xff] }
  0xda   :  { %v164_v7 = vadd.f32 1.0, %v1421_v6 }
  0xdb   :  { %608 = vmatpush.msra.mxu2 %v1723_v15 }
  0xdc   :  { %1422 = vrcp.f32 %v164_v7  ;;  %vm170_vm4 = vweird.f32 %v164_v7  ;;  %v176_v12 = vand.u32 2147483648, %v164_v7  ;;  %v174_v15 = vand.u32 2147483647, %v164_v7 }
  0xdd   :  { %609 = vmatpush.msra.mxu2 %v1730_v17 }
  0xde   :  { %v177_v17 = vor.u32 1.1754944e-38, %v176_v12  ;;  %vm175_vm7 = vcmp.eq.f32.partialorder %v174_v15, 8.507059e+37 }
  0xdf   :  { %610 = vmatpush.msra.mxu2 %v1737_v19 }
  0xe1   :  { %611 = vmatpush.msra.mxu2 %v1744_v21 }
  0xe2   :  { %v1423_v8 = vpop.eup %1422 }
  0xe3   :  { %612 = vmatpush.msra.mxu2 %v1751_v23  ;;  %v166_v9 = vmul.f32 %v1423_v8, %v164_v7  ;;  %vm171_vm5 = vweird.f32 %v1423_v8 }
  0xe4   :  { %vm172_vm6 = vmor %vm170_vm4, %vm171_vm5 }
  0xe5   :  { %613 = vmatpush.msra.mxu2 %v1758_v25  ;;  %v167_v10 = vsub.f32 1.0, %v166_v9 }
  0xe7   :  { %614 = vmatpush.msra.mxu2 %v1765_v27  ;;  %v168_v11 = vmul.f32 %v1423_v8, %v167_v10 }
  0xe9   :  { %615 = vmatpush.msra.mxu2 %v1772_v29  ;;  %v169_v14 = vadd.f32 %v1423_v8, %v168_v11 }
  0xeb   :  { %616 = vmatpush.msra.mxu2 %v1807_v31  ;;  %v173_v19 = vsel %vm172_vm6, %v1423_v8, %v169_v14 }
  0xec   :  { %v178_v20 = vsel %vm175_vm7, %v177_v17, %v173_v19 }
  0xed   :  { %617 = vmatpush.msra.mxu2 %v1811_v32  ;;  %v220_v21 = vsub.f32 1.0, %v178_v20  ;;  %v219_v23 = vmul.f32 0.0, %v178_v20  ;;  %v387_v20 = vld [vmem:[#allocation2 + $0x38] sm:$0xff] }
 0x151   :  { %v214_v16 = vpop.f32.mrf.mxu2 }
 0x152   :  { %v217_v18 = vadd.f32 %v214_v16, %v67_v13 }
 0x154   :  { %1424 = vtanh.f32 %v217_v18 }
 0x15a   :  { %v1425_v22 = vpop.eup %1424 }
 0x15b   :  { %v221_v24 = vmul.f32 %v1425_v22, %v220_v21 }
 0x15d   :  { %v1945_v25 = vadd.f32 %v221_v24, %v219_v23 }
 0x15f   :  { %223 = vst [vmem:[#allocation8] sm:$0xff] %v1945_v25  ;;  %276 = vmatmul.f32.vlgmr.msra.gmra.mxu3 %v1945_v25  ;;  %296 = vmatmul.f32.vlgmr.msrb.gmra.mxu0 %v1945_v25 }
 0x160   :  { %679 = vmatpush.msra.mxu3 %v1813_v33 }
 0x162   :  { %680 = vmatpush.msra.mxu3 %v1818_v34 }
 0x164   :  { %681 = vmatpush.msra.mxu3 %v1823_v35 }
 0x166   :  { %682 = vmatpush.msra.mxu3 %v1829_v36 }
 0x168   :  { %683 = vmatpush.msra.mxu3 %v1834_v37 }
 0x16a   :  { %684 = vmatpush.msra.mxu3 %v1839_v38 }
 0x16c   :  { %685 = vmatpush.msra.mxu3 %v1844_v39 }
 0x16e   :  { %686 = vmatpush.msra.mxu3 %v1848_v40 }
 0x170   :  { %687 = vmatpush.msra.mxu3 %v1851_v41 }
 0x172   :  { %688 = vmatpush.msra.mxu3 %v1856_v42 }
 0x174   :  { %689 = vmatpush.msra.mxu3 %v1861_v43  ;;  %v226_v43 = vld [vmem:[#allocation2 + $0x20] sm:$0xff] }
 0x176   :  { %690 = vmatpush.msra.mxu3 %v1866_v44 }
 0x178   :  { %691 = vmatpush.msra.mxu3 %v1871_v45 }
 0x17a   :  { %692 = vmatpush.msra.mxu3 %v1876_v46 }
 0x17c   :  { %693 = vmatpush.msra.mxu3 %v1881_v47 }
 0x17e   :  { %694 = vmatpush.msra.mxu3 %v1886_v48 }
 0x1dc   :  { %v297_v44 = vpop.f32.mrf.mxu0 }
 0x1dd   :  { %v320_v45 = vadd.f32 %v297_v44, %v226_v43  ;;  %v547_v44 = vld [vmem:[#allocation2 + $0x48] sm:$0xff] }
 0x1df   :  { %v1391_v46 = vmul.f32 -1.442695, %v320_v45 }
 0x1e2   :  { %v277_v27 = vpop.f32.mrf.mxu3 }
 0x1e3   :  { %v300_v28 = vadd.f32 %v277_v27, %v225_v26 }
 0x1e5   :  { %v1390_v29 = vmul.f32 -1.442695, %v300_v28 }
 0x1e7   :  { %1426 = vpow2.f32 %v1390_v29 }
 0x1ed   :  { %v1427_v30 = vpop.eup %1426 }
 0x1ee   :  { %v304_v31 = vadd.f32 1.0, %v1427_v30  ;;  %v388_v30 = vld [vmem:[#allocation2 + $0x40] sm:$0xff] }
 0x1f0   :  { %1428 = vrcp.f32 %v304_v31  ;;  %v316_v35 = vand.u32 2147483648, %v304_v31  ;;  %v314_v37 = vand.u32 2147483647, %v304_v31  ;;  %vm310_vm9 = vweird.f32 %v304_v31 }
 0x1f1   :  { %1430 = vpow2.f32 %v1391_v46 }
 0x1f2   :  { %v317_v39 = vor.u32 1.1754944e-38, %v316_v35  ;;  %vm315_vm11 = vcmp.eq.f32.partialorder %v314_v37, 8.507059e+37 }
 0x1f6   :  { %v1429_v32 = vpop.eup %1428 }
 0x1f7   :  { %v306_v33 = vmul.f32 %v1429_v32, %v304_v31  ;;  %vm311_vm8 = vweird.f32 %v1429_v32  ;;  %v1431_v47 = vpop.eup %1430 }
 0x1f8   :  { %vm312_vm10 = vmor %vm310_vm9, %vm311_vm8  ;;  %v324_v48 = vadd.f32 1.0, %v1431_v47  ;;  %v1973_v47 = vld [vmem:[#allocation5 + $0xf0] sm:$0xff] }
 0x1f9   :  { %v307_v34 = vsub.f32 1.0, %v306_v33  ;;  %743 = vmatpush.msrb.mxu0 %v1973_v47 }
 0x1fa   :  { %1432 = vrcp.f32 %v324_v48  ;;  %v336_v55 = vand.u32 2147483648, %v324_v48  ;;  %vm330_vm13 = vweird.f32 %v324_v48  ;;  %v334_v56 = vand.u32 2147483647, %v324_v48 }
 0x1fb   :  { %v308_v36 = vmul.f32 %v1429_v32, %v307_v34 }
 0x1fc   :  { %v337_v60 = vor.u32 1.1754944e-38, %v336_v55  ;;  %vm335_vm15 = vcmp.eq.f32.partialorder %v334_v56, 8.507059e+37  ;;  %v1992_v55 = vld [vmem:[#allocation5 + $0xc8] sm:$0xff]  ;;  %v1997_v56 = vld [vmem:[#allocation5 + $0xb0] sm:$0xff] }
 0x1fd   :  { %v309_v38 = vadd.f32 %v1429_v32, %v308_v36 }
 0x1ff   :  { %v313_v40 = vsel %vm312_vm10, %v1429_v32, %v309_v38 }
 0x200   :  { %v318_v41 = vsel %vm315_vm11, %v317_v39, %v313_v40  ;;  %v1433_v49 = vpop.eup %1432 }
 0x201   :  { %v340_v42 = vmul.f32 %v318_v41, %v1945_v25  ;;  %v326_v50 = vmul.f32 %v1433_v49, %v324_v48  ;;  %vm331_vm12 = vweird.f32 %v1433_v49  ;;  %v1975_v48 = vld [vmem:[#allocation5 + $0xf8] sm:$0xff] }
 0x202   :  { %vm332_vm14 = vmor %vm330_vm13, %vm331_vm12 }
 0x203   :  { %373 = vmatmul.f32.vlgmr.msrb.gmra.mxu1 %v340_v42  ;;  %v327_v51 = vsub.f32 1.0, %v326_v50  ;;  %v1981_v50 = vld [vmem:[#allocation5 + $0xe8] sm:$0xff] }
 0x204   :  { %763 = vmatpush.msrb.mxu1 %v1975_v48 }
 0x205   :  { %v328_v52 = vmul.f32 %v1433_v49, %v327_v51 }
 0x206   :  { %764 = vmatpush.msrb.mxu1 %v1981_v50 }
 0x207   :  { %v329_v54 = vadd.f32 %v1433_v49, %v328_v52  ;;  %v1983_v52 = vld [vmem:[#allocation5 + $0xd0] sm:$0xff] }
 0x209   :  { %v333_v59 = vsel %vm332_vm14, %v1433_v49, %v329_v54  ;;  %v1977_v49 = vld [vmem:[#allocation5 + $0xe0] sm:$0xff] }
 0x20a   :  { %v338_v61 = vsel %vm335_vm15, %v337_v60, %v333_v59  ;;  %744 = vmatpush.msrb.mxu0 %v1977_v49  ;;  %v1990_v54 = vld [vmem:[#allocation5 + $0xc0] sm:$0xff]  ;;  %v2006_v59 = vld [vmem:[#allocation5 + $0xa8] sm:$0xff] }
 0x20b   :  { %v380_v62 = vsub.f32 1.0, %v338_v61  ;;  %v379_v0 = vmul.f32 %v338_v61, %v1945_v25  ;;  %v2011_v61 = vld [vmem:[#allocation5 + $0x90] sm:$0xff] }
 0x20c   :  { %745 = vmatpush.msrb.mxu0 %v1983_v52 }
 0x20e   :  { %746 = vmatpush.msrb.mxu0 %v1990_v54 }
 0x210   :  { %747 = vmatpush.msrb.mxu0 %v1997_v56 }
 0x280   :  { %v374_v57 = vpop.f32.mrf.mxu1 }
 0x281   :  { %v377_v58 = vadd.f32 %v374_v57, %v227_v53  ;;  %v1985_v53 = vld [vmem:[#allocation5 + $0xd8] sm:$0xff] }
 0x282   :  { %765 = vmatpush.msrb.mxu1 %v1985_v53  ;;  %v1999_v57 = vld [vmem:[#allocation5 + $0xb8] sm:$0xff] }
 0x283   :  { %1434 = vtanh.f32 %v377_v58  ;;  %v2004_v58 = vld [vmem:[#allocation5 + $0xa0] sm:$0xff] }
 0x284   :  { %766 = vmatpush.msrb.mxu1 %v1992_v55  ;;  %748 = vmatpush.msrb.mxu0 %v2004_v58 }
 0x286   :  { %767 = vmatpush.msrb.mxu1 %v1999_v57  ;;  %749 = vmatpush.msrb.mxu0 %v2011_v61 }
 0x288   :  { %768 = vmatpush.msrb.mxu1 %v2006_v59 }
 0x289   :  { %v1435_v63 = vpop.eup %1434 }
 0x28a   :  { %v381_v1 = vmul.f32 %v1435_v63, %v380_v62  ;;  %v2013_v62 = vld [vmem:[#allocation5 + $0x98] sm:$0xff] }
 0x28b   :  { %769 = vmatpush.msrb.mxu1 %v2013_v62 }
 0x28c   :  { %v382_v2 = vadd.f32 %v381_v1, %v379_v0  ;;  %v2018_v0 = vld [vmem:[#allocation5 + $0x80] sm:$0xff]  ;;  %v2020_v1 = vld [vmem:[#allocation5 + $0x88] sm:$0xff] }
 0x28d   :  { %750 = vmatpush.msrb.mxu0 %v2018_v0  ;;  %770 = vmatpush.msrb.mxu1 %v2020_v1 }
 0x28e   :  { %384 = vst [vmem:[#allocation8 + $0x8] sm:$0xff] %v382_v2  ;;  %437 = vmatmul.f32.vlgmr.msrb.gmra.mxu2 %v382_v2  ;;  %457 = vmatmul.f32.vlgmr.msrb.gmra.mxu3 %v382_v2 }
 0x28f   :  { %904 = vmatpush.msrb.mxu3 %v1973_v47 }
 0x291   :  { %905 = vmatpush.msrb.mxu3 %v1977_v49 }
 0x293   :  { %906 = vmatpush.msrb.mxu3 %v1983_v52 }
 0x295   :  { %907 = vmatpush.msrb.mxu3 %v1990_v54 }
 0x297   :  { %908 = vmatpush.msrb.mxu3 %v1997_v56 }
 0x299   :  { %909 = vmatpush.msrb.mxu3 %v2004_v58 }
 0x29b   :  { %910 = vmatpush.msrb.mxu3 %v2011_v61 }
 0x29d   :  { %911 = vmatpush.msrb.mxu3 %v2018_v0 }
 0x311   :  { %v438_v4 = vpop.f32.mrf.mxu2  ;;  %v458_v21 = vpop.f32.mrf.mxu3 }
 0x312   :  { %v461_v5 = vadd.f32 %v438_v4, %v386_v3  ;;  %v481_v22 = vadd.f32 %v458_v21, %v387_v20  ;;  %v2027_v3 = vld [vmem:[#allocation5 + $0x78] sm:$0xff]  ;;  %v2039_v20 = vld [vmem:[#allocation5 + $0x68] sm:$0xff] }
 0x313   :  { %771 = vmatpush.msrb.mxu1 %v2027_v3 }
 0x314   :  { %v1392_v6 = vmul.f32 -1.442695, %v461_v5  ;;  %v1393_v23 = vmul.f32 -1.442695, %v481_v22  ;;  %v2043_v22 = vld [vmem:[#allocation5 + $0x50] sm:$0xff] }
 0x315   :  { %772 = vmatpush.msrb.mxu1 %v2039_v20 }
 0x316   :  { %1436 = vpow2.f32 %v1392_v6 }
 0x31c   :  { %v1437_v7 = vpop.eup %1436 }
 0x31d   :  { %v465_v8 = vadd.f32 1.0, %v1437_v7 }
 0x31f   :  { %1438 = vrcp.f32 %v465_v8  ;;  %v477_v12 = vand.u32 2147483648, %v465_v8  ;;  %v475_v14 = vand.u32 2147483647, %v465_v8  ;;  %vm471_vm1 = vweird.f32 %v465_v8 }
 0x320   :  { %1440 = vpow2.f32 %v1393_v23  ;;  %v2045_v23 = vld [vmem:[#allocation5 + $0x58] sm:$0xff] }
 0x321   :  { %v478_v16 = vor.u32 1.1754944e-38, %v477_v12  ;;  %vm476_vm3 = vcmp.eq.f32.partialorder %v475_v14, 8.507059e+37  ;;  %773 = vmatpush.msrb.mxu1 %v2045_v23 }
 0x325   :  { %v1439_v9 = vpop.eup %1438 }
 0x326   :  { %v467_v10 = vmul.f32 %v1439_v9, %v465_v8  ;;  %vm472_vm0 = vweird.f32 %v1439_v9  ;;  %v1441_v24 = vpop.eup %1440 }
 0x327   :  { %vm473_vm2 = vmor %vm471_vm1, %vm472_vm0  ;;  %v485_v25 = vadd.f32 1.0, %v1441_v24 }
 0x328   :  { %v468_v11 = vsub.f32 1.0, %v467_v10 }
 0x329   :  { %1442 = vrcp.f32 %v485_v25  ;;  %v497_v32 = vand.u32 2147483648, %v485_v25  ;;  %vm491_vm5 = vweird.f32 %v485_v25  ;;  %v495_v33 = vand.u32 2147483647, %v485_v25 }
 0x32a   :  { %v469_v13 = vmul.f32 %v1439_v9, %v468_v11 }
 0x32b   :  { %v498_v37 = vor.u32 1.1754944e-38, %v497_v32  ;;  %vm496_vm7 = vcmp.eq.f32.partialorder %v495_v33, 8.507059e+37  ;;  %v2076_v32 = vld [vmem:[#allocation5 + $0x18] sm:$0xff]  ;;  %v2081_v33 = vld [vmem:[#allocation5] sm:$0xff] }
 0x32c   :  { %v470_v15 = vadd.f32 %v1439_v9, %v469_v13 }
 0x32e   :  { %v474_v17 = vsel %vm473_vm2, %v1439_v9, %v470_v15  ;;  %v548_v15 = vld [vmem:[#allocation2 + $0x50] sm:$0xff] }
 0x32f   :  { %v479_v18 = vsel %vm476_vm3, %v478_v16, %v474_v17  ;;  %v1443_v26 = vpop.eup %1442 }
 0x330   :  { %v501_v19 = vmul.f32 %v479_v18, %v382_v2  ;;  %v487_v27 = vmul.f32 %v1443_v26, %v485_v25  ;;  %vm492_vm4 = vweird.f32 %v1443_v26  ;;  %v2052_v25 = vld [vmem:[#allocation5 + $0x40] sm:$0xff] }
 0x331   :  { %vm493_vm6 = vmor %vm491_vm5, %vm492_vm4 }
 0x332   :  { %534 = vmatmul.f32.vlgmr.msra.gmra.mxu0 %v501_v19  ;;  %v488_v28 = vsub.f32 1.0, %v487_v27  ;;  %v2037_v19 = vld [vmem:[#allocation5 + $0x60] sm:$0xff]  ;;  %v2059_v27 = vld [vmem:[#allocation5 + $0x30] sm:$0xff] }
 0x334   :  { %v489_v29 = vmul.f32 %v1443_v26, %v488_v28  ;;  %v2061_v28 = vld [vmem:[#allocation5 + $0x38] sm:$0xff] }
 0x336   :  { %v490_v31 = vadd.f32 %v1443_v26, %v489_v29  ;;  %v2067_v29 = vld [vmem:[#allocation5 + $0x20] sm:$0xff] }
 0x338   :  { %v494_v36 = vsel %vm493_vm6, %v1443_v26, %v490_v31  ;;  %v2054_v26 = vld [vmem:[#allocation5 + $0x48] sm:$0xff]  ;;  %v2074_v31 = vld [vmem:[#allocation5 + $0x10] sm:$0xff] }
 0x339   :  { %v499_v38 = vsel %vm496_vm7, %v498_v37, %v494_v36  ;;  %774 = vmatpush.msrb.mxu1 %v2054_v26 }
 0x33a   :  { %v541_v39 = vsub.f32 1.0, %v499_v38  ;;  %v540_v41 = vmul.f32 %v499_v38, %v382_v2  ;;  %v2025_v2 = vld [vmem:[#allocation5 + $0x70] sm:$0xff] }
 0x33b   :  { %751 = vmatpush.msrb.mxu0 %v2025_v2  ;;  %912 = vmatpush.msrb.mxu3 %v2025_v2 }
 0x33c   :  { %775 = vmatpush.msrb.mxu1 %v2061_v28 }
 0x33d   :  { %752 = vmatpush.msrb.mxu0 %v2037_v19  ;;  %913 = vmatpush.msrb.mxu3 %v2037_v19 }
 0x33f   :  { %753 = vmatpush.msrb.mxu0 %v2043_v22  ;;  %914 = vmatpush.msrb.mxu3 %v2043_v22 }
 0x341   :  { %754 = vmatpush.msrb.mxu0 %v2052_v25  ;;  %915 = vmatpush.msrb.mxu3 %v2052_v25 }
 0x343   :  { %755 = vmatpush.msrb.mxu0 %v2059_v27  ;;  %916 = vmatpush.msrb.mxu3 %v2059_v27 }
 0x345   :  { %756 = vmatpush.msrb.mxu0 %v2067_v29  ;;  %917 = vmatpush.msrb.mxu3 %v2067_v29 }
 0x347   :  { %757 = vmatpush.msrb.mxu0 %v2074_v31  ;;  %918 = vmatpush.msrb.mxu3 %v2074_v31 }
 0x349   :  { %758 = vmatpush.msrb.mxu0 %v2081_v33  ;;  %919 = vmatpush.msrb.mxu3 %v2081_v33 }
 0x34b   :  { %924 = vmatpush.msra.mxu0 %v1975_v48 }
 0x34d   :  { %925 = vmatpush.msra.mxu0 %v1981_v50 }
 0x34f   :  { %926 = vmatpush.msra.mxu0 %v1985_v53 }
 0x351   :  { %927 = vmatpush.msra.mxu0 %v1992_v55 }
 0x353   :  { %928 = vmatpush.msra.mxu0 %v1999_v57 }
 0x355   :  { %929 = vmatpush.msra.mxu0 %v2006_v59 }
 0x357   :  { %930 = vmatpush.msra.mxu0 %v2013_v62 }
 0x359   :  { %931 = vmatpush.msra.mxu0 %v2020_v1 }
 0x35b   :  { %932 = vmatpush.msra.mxu0 %v2027_v3 }
 0x35d   :  { %933 = vmatpush.msra.mxu0 %v2039_v20 }
 0x35f   :  { %934 = vmatpush.msra.mxu0 %v2045_v23 }
 0x361   :  { %935 = vmatpush.msra.mxu0 %v2054_v26 }
 0x363   :  { %936 = vmatpush.msra.mxu0 %v2061_v28 }
 0x3af   :  { %v535_v34 = vpop.f32.mrf.mxu0 }
 0x3b0   :  { %v538_v35 = vadd.f32 %v535_v34, %v388_v30  ;;  %v2069_v30 = vld [vmem:[#allocation5 + $0x28] sm:$0xff] }
 0x3b1   :  { %776 = vmatpush.msrb.mxu1 %v2069_v30  ;;  %v2083_v34 = vld [vmem:[#allocation5 + $0x8] sm:$0xff]  ;;  %937 = vmatpush.msra.mxu0 %v2069_v30 }
 0x3b2   :  { %1444 = vtanh.f32 %v538_v35 }
 0x3b3   :  { %777 = vmatpush.msrb.mxu1 %v2076_v32  ;;  %938 = vmatpush.msra.mxu0 %v2076_v32 }
 0x3b5   :  { %778 = vmatpush.msrb.mxu1 %v2083_v34  ;;  %939 = vmatpush.msra.mxu0 %v2083_v34 }
 0x3b8   :  { %v1445_v40 = vpop.eup %1444 }
 0x3b9   :  { %v542_v42 = vmul.f32 %v1445_v40, %v541_v39  ;;  %v549_v39 = vld [vmem:[#allocation2 + $0x58] sm:$0xff] }
 0x3bb   :  { %v1968_v43 = vadd.f32 %v542_v42, %v540_v41 }
 0x3bd   :  { %545 = vst [vmem:[#allocation8 + $0x10] sm:$0xff] %v1968_v43  ;;  %598 = vmatmul.f32.vlgmr.msra.gmra.mxu1 %v1968_v43  ;;  %618 = vmatmul.f32.vlgmr.msra.gmra.mxu2 %v1968_v43 }
 0x43a   :  { %v599_v45 = vpop.f32.mrf.mxu1 }
 0x43b   :  { %v622_v46 = vadd.f32 %v599_v45, %v547_v44 }
 0x43d   :  { %v1394_v51 = vmul.f32 -1.442695, %v622_v46 }
 0x43f   :  { %1446 = vpow2.f32 %v1394_v51 }
 0x440   :  { %v619_v16 = vpop.f32.mrf.mxu2 }
 0x441   :  { %v642_v17 = vadd.f32 %v619_v16, %v548_v15  ;;  %v2170_v15 = vld [vmem:[#allocation7 + $0x38] sm:$0xff]  ;;  %v2175_v16 = vld [vmem:[#allocation7 + $0x30] sm:$0xff] }
 0x443   :  { %v1395_v18 = vmul.f32 -1.442695, %v642_v17  ;;  %v2180_v17 = vld [vmem:[#allocation7 + $0x28] sm:$0xff] }
 0x445   :  { %v1447_v60 = vpop.eup %1446 }
 0x446   :  { %v626_v63 = vadd.f32 1.0, %v1447_v60 }
 0x448   :  { %1448 = vrcp.f32 %v626_v63  ;;  %v638_v7 = vand.u32 2147483648, %v626_v63  ;;  %v636_v9 = vand.u32 2147483647, %v626_v63  ;;  %vm632_vm9 = vweird.f32 %v626_v63 }
 0x449   :  { %1450 = vpow2.f32 %v1395_v18  ;;  %v2185_v18 = vld [vmem:[#allocation7 + $0x20] sm:$0xff] }
 0x44a   :  { %v639_v11 = vor.u32 1.1754944e-38, %v638_v7  ;;  %vm637_vm11 = vcmp.eq.f32.partialorder %v636_v9, 8.507059e+37  ;;  %v2140_v9 = vld [vmem:[#allocation7 + $0x68] sm:$0xff] }
 0x44e   :  { %v1449_v4 = vpop.eup %1448 }
 0x44f   :  { %v628_v5 = vmul.f32 %v1449_v4, %v626_v63  ;;  %vm633_vm8 = vweird.f32 %v1449_v4  ;;  %v1451_v21 = vpop.eup %1450 }
 0x450   :  { %vm634_vm10 = vmor %vm632_vm9, %vm633_vm8  ;;  %v2050_v24 = vadd.f32 1.0, %v1451_v21  ;;  %v2190_v21 = vld [vmem:[#allocation7 + $0x18] sm:$0xff] }
 0x451   :  { %v629_v6 = vsub.f32 1.0, %v628_v5 }
 0x452   :  { %1452 = vrcp.f32 %v2050_v24  ;;  %v658_v41 = vand.u32 2147483648, %v2050_v24  ;;  %vm652_vm13 = vweird.f32 %v2050_v24  ;;  %v656_v42 = vand.u32 2147483647, %v2050_v24 }
 0x453   :  { %v630_v8 = vmul.f32 %v1449_v4, %v629_v6 }
 0x454   :  { %v659_v51 = vor.u32 1.1754944e-38, %v658_v41  ;;  %vm657_vm15 = vcmp.eq.f32.partialorder %v656_v42, 8.507059e+37 }
 0x455   :  { %v631_v10 = vadd.f32 %v1449_v4, %v630_v8  ;;  %v2135_v8 = vld [vmem:[#allocation7 + $0x70] sm:$0xff] }
 0x457   :  { %v635_v12 = vsel %vm634_vm10, %v1449_v4, %v631_v10  ;;  %v2145_v10 = vld [vmem:[#allocation7 + $0x60] sm:$0xff] }
 0x458   :  { %v640_v13 = vsel %vm637_vm11, %v639_v11, %v635_v12  ;;  %v1453_v35 = vpop.eup %1452  ;;  %v2150_v11 = vld [vmem:[#allocation7 + $0x58] sm:$0xff]  ;;  %v2155_v12 = vld [vmem:[#allocation7 + $0x50] sm:$0xff] }
 0x459   :  { %v662_v14 = vmul.f32 %v640_v13, %v1968_v43  ;;  %v648_v36 = vmul.f32 %v1453_v35, %v2050_v24  ;;  %vm653_vm12 = vweird.f32 %v1453_v35  ;;  %v2160_v13 = vld [vmem:[#allocation7 + $0x48] sm:$0xff]  ;;  %v2192_v24 = vld [vmem:[#allocation7 + $0x10] sm:$0xff] }
 0x45a   :  { %vm654_vm14 = vmor %vm652_vm13, %vm653_vm12 }
 0x45b   :  { %695 = vmatmul.f32.vlgmr.msra.gmra.mxu3 %v662_v14  ;;  %v649_v37 = vsub.f32 1.0, %v648_v36  ;;  %v2165_v14 = vld [vmem:[#allocation7 + $0x40] sm:$0xff] }
 0x45c   :  { %1085 = vmatpush.msra.mxu3 %v1975_v48  ;;  %v708_v36 = vld [vmem:[#allocation2 + $0x60] sm:$0xff] }
 0x45d   :  { %v650_v38 = vmul.f32 %v1453_v35, %v649_v37  ;;  %v2202_v37 = vld [vmem:[#allocation7] sm:$0xff] }
 0x45e   :  { %1086 = vmatpush.msra.mxu3 %v1981_v50 }
 0x45f   :  { %v651_v40 = vadd.f32 %v1453_v35, %v650_v38 }
 0x460   :  { %1087 = vmatpush.msra.mxu3 %v1985_v53 }
 0x461   :  { %v655_v46 = vsel %vm654_vm14, %v1453_v35, %v651_v40  ;;  %v2197_v35 = vld [vmem:[#allocation7 + $0x8] sm:$0xff] }
 0x462   :  { %1088 = vmatpush.msra.mxu3 %v1992_v55  ;;  %v660_v60 = vsel %vm657_vm15, %v659_v51, %v655_v46  ;;  %v869_v51 = vld [vmem:[#allocation2 + $0x78] sm:$0xff] }
 0x463   :  { %v702_v63 = vsub.f32 1.0, %v660_v60  ;;  %v701_v5 = vmul.f32 %v660_v60, %v1968_v43  ;;  %v2131_v43 = vld [vmem:[#allocation7 + $0x78] sm:$0xff] }
 0x464   :  { %1089 = vmatpush.msra.mxu3 %v1999_v57  ;;  %840 = vmatpush.msrb.mxu2 %v2131_v43 }
 0x465   :  { %1001 = vmatpush.msra.mxu1 %v2131_v43 }
 0x466   :  { %1090 = vmatpush.msra.mxu3 %v2006_v59  ;;  %841 = vmatpush.msrb.mxu2 %v2135_v8 }
 0x467   :  { %1002 = vmatpush.msra.mxu1 %v2135_v8 }
 0x468   :  { %1091 = vmatpush.msra.mxu3 %v2013_v62  ;;  %842 = vmatpush.msrb.mxu2 %v2140_v9 }
 0x469   :  { %1003 = vmatpush.msra.mxu1 %v2140_v9 }
 0x46a   :  { %1092 = vmatpush.msra.mxu3 %v2020_v1  ;;  %843 = vmatpush.msrb.mxu2 %v2145_v10 }
 0x46b   :  { %1004 = vmatpush.msra.mxu1 %v2145_v10 }
 0x46c   :  { %1093 = vmatpush.msra.mxu3 %v2027_v3  ;;  %844 = vmatpush.msrb.mxu2 %v2150_v11 }
 0x46d   :  { %1005 = vmatpush.msra.mxu1 %v2150_v11 }
 0x46e   :  { %1094 = vmatpush.msra.mxu3 %v2039_v20  ;;  %845 = vmatpush.msrb.mxu2 %v2155_v12 }
 0x46f   :  { %1006 = vmatpush.msra.mxu1 %v2155_v12 }
 0x470   :  { %1095 = vmatpush.msra.mxu3 %v2045_v23  ;;  %846 = vmatpush.msrb.mxu2 %v2160_v13 }
 0x471   :  { %1007 = vmatpush.msra.mxu1 %v2160_v13 }
 0x472   :  { %1096 = vmatpush.msra.mxu3 %v2054_v26  ;;  %847 = vmatpush.msrb.mxu2 %v2165_v14 }
 0x473   :  { %1008 = vmatpush.msra.mxu1 %v2165_v14 }
 0x474   :  { %1097 = vmatpush.msra.mxu3 %v2061_v28  ;;  %848 = vmatpush.msrb.mxu2 %v2170_v15 }
 0x475   :  { %1009 = vmatpush.msra.mxu1 %v2170_v15 }
 0x476   :  { %1098 = vmatpush.msra.mxu3 %v2069_v30  ;;  %849 = vmatpush.msrb.mxu2 %v2175_v16 }
 0x477   :  { %1010 = vmatpush.msra.mxu1 %v2175_v16 }
 0x478   :  { %1099 = vmatpush.msra.mxu3 %v2076_v32  ;;  %850 = vmatpush.msrb.mxu2 %v2180_v17 }
 0x479   :  { %1011 = vmatpush.msra.mxu1 %v2180_v17 }
 0x47a   :  { %1100 = vmatpush.msra.mxu3 %v2083_v34  ;;  %851 = vmatpush.msrb.mxu2 %v2185_v18 }
 0x47b   :  { %1012 = vmatpush.msra.mxu1 %v2185_v18 }
 0x47c   :  { %852 = vmatpush.msrb.mxu2 %v2190_v21 }
 0x47d   :  { %1013 = vmatpush.msra.mxu1 %v2190_v21 }
 0x47e   :  { %853 = vmatpush.msrb.mxu2 %v2192_v24 }
 0x47f   :  { %1014 = vmatpush.msra.mxu1 %v2192_v24 }
 0x480   :  { %854 = vmatpush.msrb.mxu2 %v2197_v35 }
 0x481   :  { %1015 = vmatpush.msra.mxu1 %v2197_v35 }
 0x482   :  { %855 = vmatpush.msrb.mxu2 %v2202_v37 }
 0x483   :  { %1016 = vmatpush.msra.mxu1 %v2202_v37 }
 0x484   :  { %1065 = vmatpush.msra.mxu2 %v1973_v47 }
 0x486   :  { %1066 = vmatpush.msra.mxu2 %v1977_v49 }
 0x488   :  { %1067 = vmatpush.msra.mxu2 %v1983_v52 }
 0x48a   :  { %1068 = vmatpush.msra.mxu2 %v1990_v54 }
 0x48c   :  { %1069 = vmatpush.msra.mxu2 %v1997_v56 }
 0x48e   :  { %1070 = vmatpush.msra.mxu2 %v2004_v58 }
 0x490   :  { %1071 = vmatpush.msra.mxu2 %v2011_v61 }
 0x492   :  { %1072 = vmatpush.msra.mxu2 %v2018_v0 }
 0x494   :  { %1073 = vmatpush.msra.mxu2 %v2025_v2 }
 0x496   :  { %1074 = vmatpush.msra.mxu2 %v2037_v19 }
 0x498   :  { %1075 = vmatpush.msra.mxu2 %v2043_v22 }
 0x49a   :  { %1076 = vmatpush.msra.mxu2 %v2052_v25 }
 0x49c   :  { %1077 = vmatpush.msra.mxu2 %v2059_v27 }
 0x49e   :  { %1078 = vmatpush.msra.mxu2 %v2067_v29 }
 0x4a0   :  { %1079 = vmatpush.msra.mxu2 %v2074_v31 }
 0x4a2   :  { %1080 = vmatpush.msra.mxu2 %v2081_v33 }
 0x4de   :  { %v696_v44 = vpop.f32.mrf.mxu3 }
 0x4df   :  { %v699_v45 = vadd.f32 %v696_v44, %v549_v39 }
 0x4e1   :  { %1454 = vtanh.f32 %v699_v45 }
 0x4e7   :  { %v1455_v4 = vpop.eup %1454 }
 0x4e8   :  { %v703_v6 = vmul.f32 %v1455_v4, %v702_v63 }
 0x4ea   :  { %v2123_v7 = vadd.f32 %v703_v6, %v701_v5 }
 0x4ec   :  { %706 = vst [vmem:[#allocation8 + $0x18] sm:$0xff] %v2123_v7  ;;  %759 = vmatmul.f32.vlgmr.msrb.gmra.mxu0 %v2123_v7  ;;  %779 = vmatmul.f32.vlgmr.msrb.gmra.mxu1 %v2123_v7 }
 0x4ed   :  { %1162 = vmatpush.msrb.mxu0 %v2131_v43  ;;  %1226 = vmatpush.msrb.mxu1 %v1973_v47 }
 0x4ef   :  { %1163 = vmatpush.msrb.mxu0 %v2135_v8  ;;  %1227 = vmatpush.msrb.mxu1 %v1977_v49 }
 0x4f1   :  { %1164 = vmatpush.msrb.mxu0 %v2140_v9  ;;  %1228 = vmatpush.msrb.mxu1 %v1983_v52 }
 0x4f3   :  { %1165 = vmatpush.msrb.mxu0 %v2145_v10  ;;  %1229 = vmatpush.msrb.mxu1 %v1990_v54 }
 0x4f5   :  { %1166 = vmatpush.msrb.mxu0 %v2150_v11  ;;  %1230 = vmatpush.msrb.mxu1 %v1997_v56 }
 0x4f7   :  { %1167 = vmatpush.msrb.mxu0 %v2155_v12  ;;  %1231 = vmatpush.msrb.mxu1 %v2004_v58 }
 0x4f9   :  { %1168 = vmatpush.msrb.mxu0 %v2160_v13  ;;  %1232 = vmatpush.msrb.mxu1 %v2011_v61 }
 0x4fb   :  { %1169 = vmatpush.msrb.mxu0 %v2165_v14  ;;  %1233 = vmatpush.msrb.mxu1 %v2018_v0 }
 0x4fd   :  { %1170 = vmatpush.msrb.mxu0 %v2170_v15  ;;  %1234 = vmatpush.msrb.mxu1 %v2025_v2 }
 0x4ff   :  { %1171 = vmatpush.msrb.mxu0 %v2175_v16  ;;  %1235 = vmatpush.msrb.mxu1 %v2037_v19 }
 0x501   :  { %1172 = vmatpush.msrb.mxu0 %v2180_v17  ;;  %1236 = vmatpush.msrb.mxu1 %v2043_v22 }
 0x503   :  { %1173 = vmatpush.msrb.mxu0 %v2185_v18  ;;  %1237 = vmatpush.msrb.mxu1 %v2052_v25 }
 0x505   :  { %1174 = vmatpush.msrb.mxu0 %v2190_v21  ;;  %1238 = vmatpush.msrb.mxu1 %v2059_v27 }
 0x507   :  { %1175 = vmatpush.msrb.mxu0 %v2192_v24  ;;  %1239 = vmatpush.msrb.mxu1 %v2067_v29 }
 0x509   :  { %1176 = vmatpush.msrb.mxu0 %v2197_v35  ;;  %1240 = vmatpush.msrb.mxu1 %v2074_v31 }
 0x50b   :  { %1177 = vmatpush.msrb.mxu0 %v2202_v37  ;;  %1241 = vmatpush.msrb.mxu1 %v2081_v33 }
 0x569   :  { %v760_v38 = vpop.f32.mrf.mxu0 }
 0x56a   :  { %v783_v39 = vadd.f32 %v760_v38, %v708_v36 }
 0x56c   :  { %v1396_v40 = vmul.f32 -1.442695, %v783_v39 }
 0x56e   :  { %1456 = vpow2.f32 %v1396_v40 }
 0x574   :  { %v1457_v41 = vpop.eup %1456 }
 0x575   :  { %v787_v42 = vadd.f32 1.0, %v1457_v41  ;;  %v871_v41 = vld [vmem:[#allocation2 + $0x88] sm:$0xff] }
 0x577   :  { %1458 = vrcp.f32 %v787_v42  ;;  %v799_v54 = vand.u32 2147483648, %v787_v42  ;;  %v797_v58 = vand.u32 2147483647, %v787_v42  ;;  %vm793_vm1 = vweird.f32 %v787_v42 }
 0x579   :  { %v800_v0 = vor.u32 1.1754944e-38, %v799_v54  ;;  %vm798_vm3 = vcmp.eq.f32.partialorder %v797_v58, 8.507059e+37 }
 0x57d   :  { %v1459_v47 = vpop.eup %1458 }
 0x57e   :  { %v789_v49 = vmul.f32 %v1459_v47, %v787_v42  ;;  %vm794_vm0 = vweird.f32 %v1459_v47 }
 0x57f   :  { %vm795_vm2 = vmor %vm793_vm1, %vm794_vm0 }
 0x580   :  { %v790_v52 = vsub.f32 1.0, %v789_v49 }
 0x582   :  { %v791_v56 = vmul.f32 %v1459_v47, %v790_v52 }
 0x584   :  { %v792_v61 = vadd.f32 %v1459_v47, %v791_v56 }
 0x586   :  { %v796_v2 = vsel %vm795_vm2, %v1459_v47, %v792_v61 }
 0x587   :  { %v801_v19 = vsel %vm798_vm3, %v800_v0, %v796_v2 }
 0x588   :  { %v823_v22 = vmul.f32 %v801_v19, %v2123_v7 }
 0x58a   :  { %856 = vmatmul.f32.vlgmr.msrb.gmra.mxu2 %v823_v22 }
 0x58b   :  { %1246 = vmatpush.msrb.mxu2 %v1975_v48  ;;  %v709_v48 = vld [vmem:[#allocation2 + $0x68] sm:$0xff] }
 0x58d   :  { %1247 = vmatpush.msrb.mxu2 %v1981_v50  ;;  %v780_v50 = vpop.f32.mrf.mxu1 }
 0x58f   :  { %1248 = vmatpush.msrb.mxu2 %v1985_v53  ;;  %v803_v53 = vadd.f32 %v780_v50, %v709_v48  ;;  %v1030_v50 = vld [vmem:[#allocation2 + $0x90] sm:$0xff] }
 0x591   :  { %1249 = vmatpush.msrb.mxu2 %v1992_v55  ;;  %v1397_v55 = vmul.f32 -1.442695, %v803_v53 }
 0x593   :  { %1250 = vmatpush.msrb.mxu2 %v1999_v57  ;;  %1460 = vpow2.f32 %v1397_v55 }
 0x595   :  { %1251 = vmatpush.msrb.mxu2 %v2006_v59 }
 0x597   :  { %1252 = vmatpush.msrb.mxu2 %v2013_v62 }
 0x599   :  { %1253 = vmatpush.msrb.mxu2 %v2020_v1  ;;  %v1461_v57 = vpop.eup %1460 }
 0x59a   :  { %v807_v59 = vadd.f32 1.0, %v1461_v57 }
 0x59b   :  { %1254 = vmatpush.msrb.mxu2 %v2027_v3 }
 0x59c   :  { %1462 = vrcp.f32 %v807_v59  ;;  %vm813_vm5 = vweird.f32 %v807_v59  ;;  %v817_v27 = vand.u32 2147483647, %v807_v59 }
 0x59d   :  { %1255 = vmatpush.msrb.mxu2 %v2039_v20 }
 0x59e   :  { %vm818_vm7 = vcmp.eq.f32.partialorder %v817_v27, 8.507059e+37 }
 0x59f   :  { %1256 = vmatpush.msrb.mxu2 %v2045_v23  ;;  %v710_v23 = vld [vmem:[#allocation2 + $0x70] sm:$0xff] }
 0x5a1   :  { %1257 = vmatpush.msrb.mxu2 %v2054_v26  ;;  %v819_v26 = vand.u32 2147483648, %v807_v59 }
 0x5a2   :  { %v1463_v62 = vpop.eup %1462 }
 0x5a3   :  { %1258 = vmatpush.msrb.mxu2 %v2061_v28  ;;  %v809_v1 = vmul.f32 %v1463_v62, %v807_v59  ;;  %vm814_vm4 = vweird.f32 %v1463_v62  ;;  %v820_v31 = vor.u32 1.1754944e-38, %v819_v26 }
 0x5a4   :  { %vm815_vm6 = vmor %vm813_vm5, %vm814_vm4 }
 0x5a5   :  { %1259 = vmatpush.msrb.mxu2 %v2069_v30  ;;  %v810_v3 = vsub.f32 1.0, %v809_v1 }
 0x5a7   :  { %1260 = vmatpush.msrb.mxu2 %v2076_v32  ;;  %v811_v20 = vmul.f32 %v1463_v62, %v810_v3 }
 0x5a9   :  { %1261 = vmatpush.msrb.mxu2 %v2083_v34  ;;  %v812_v25 = vadd.f32 %v1463_v62, %v811_v20 }
 0x5ab   :  { %v816_v30 = vsel %vm815_vm6, %v1463_v62, %v812_v25 }
 0x5ac   :  { %v821_v32 = vsel %vm818_vm7, %v820_v31, %v816_v30 }
 0x5ad   :  { %v863_v33 = vsub.f32 1.0, %v821_v32  ;;  %v862_v44 = vmul.f32 %v821_v32, %v2123_v7  ;;  %v1031_v32 = vld [vmem:[#allocation2 + $0x98] sm:$0xff] }
 0x60d   :  { %v857_v28 = vpop.f32.mrf.mxu2 }
 0x60e   :  { %v860_v29 = vadd.f32 %v857_v28, %v710_v23 }
 0x610   :  { %1464 = vtanh.f32 %v860_v29 }
 0x616   :  { %v1465_v34 = vpop.eup %1464 }
 0x617   :  { %v864_v45 = vmul.f32 %v1465_v34, %v863_v33 }
 0x619   :  { %v2261_v46 = vadd.f32 %v864_v45, %v862_v44 }
 0x61b   :  { %867 = vst [vmem:[#allocation8 + $0x20] sm:$0xff] %v2261_v46  ;;  %920 = vmatmul.f32.vlgmr.msrb.gmra.mxu3 %v2261_v46  ;;  %940 = vmatmul.f32.vlgmr.msra.gmra.mxu0 %v2261_v46 }
 0x61c   :  { %1323 = vmatpush.msrb.mxu3 %v2131_v43 }
 0x61e   :  { %1324 = vmatpush.msrb.mxu3 %v2135_v8 }
 0x620   :  { %1325 = vmatpush.msrb.mxu3 %v2140_v9 }
 0x622   :  { %1326 = vmatpush.msrb.mxu3 %v2145_v10 }
 0x624   :  { %1327 = vmatpush.msrb.mxu3 %v2150_v11 }
 0x626   :  { %1328 = vmatpush.msrb.mxu3 %v2155_v12 }
 0x628   :  { %1329 = vmatpush.msrb.mxu3 %v2160_v13 }
 0x62a   :  { %1330 = vmatpush.msrb.mxu3 %v2165_v14 }
 0x62c   :  { %1331 = vmatpush.msrb.mxu3 %v2170_v15 }
 0x62e   :  { %1332 = vmatpush.msrb.mxu3 %v2175_v16 }
 0x630   :  { %1333 = vmatpush.msrb.mxu3 %v2180_v17  ;;  %v870_v17 = vld [vmem:[#allocation2 + $0x80] sm:$0xff] }
 0x632   :  { %1334 = vmatpush.msrb.mxu3 %v2185_v18 }
 0x634   :  { %1335 = vmatpush.msrb.mxu3 %v2190_v21 }
 0x636   :  { %1336 = vmatpush.msrb.mxu3 %v2192_v24 }
 0x638   :  { %1337 = vmatpush.msrb.mxu3 %v2197_v35 }
 0x63a   :  { %1338 = vmatpush.msrb.mxu3 %v2202_v37 }
 0x698   :  { %v941_v18 = vpop.f32.mrf.mxu0 }
 0x699   :  { %v964_v21 = vadd.f32 %v941_v18, %v870_v17  ;;  %v1191_v18 = vld [vmem:[#allocation2 + $0xa8] sm:$0xff] }
 0x69b   :  { %v1399_v24 = vmul.f32 -1.442695, %v964_v21 }
 0x69e   :  { %v921_v60 = vpop.f32.mrf.mxu3 }
 0x69f   :  { %v944_v63 = vadd.f32 %v921_v60, %v869_v51 }
 0x6a1   :  { %v1398_v4 = vmul.f32 -1.442695, %v944_v63 }
 0x6a3   :  { %1466 = vpow2.f32 %v1398_v4 }
 0x6a9   :  { %v1467_v5 = vpop.eup %1466 }
 0x6aa   :  { %v948_v6 = vadd.f32 1.0, %v1467_v5  ;;  %v1032_v5 = vld [vmem:[#allocation2 + $0xa0] sm:$0xff] }
 0x6ac   :  { %1468 = vrcp.f32 %v948_v6  ;;  %v960_v9 = vand.u32 2147483648, %v948_v6  ;;  %v958_v11 = vand.u32 2147483647, %v948_v6  ;;  %vm954_vm9 = vweird.f32 %v948_v6 }
 0x6ad   :  { %1470 = vpow2.f32 %v1399_v24 }
 0x6ae   :  { %v961_v13 = vor.u32 1.1754944e-38, %v960_v9  ;;  %vm959_vm11 = vcmp.eq.f32.partialorder %v958_v11, 8.507059e+37 }
 0x6b2   :  { %v1469_v7 = vpop.eup %1468 }
 0x6b3   :  { %v950_v43 = vmul.f32 %v1469_v7, %v948_v6  ;;  %vm955_vm8 = vweird.f32 %v1469_v7  ;;  %v1471_v35 = vpop.eup %1470 }
 0x6b4   :  { %vm956_vm10 = vmor %vm954_vm9, %vm955_vm8  ;;  %v968_v36 = vadd.f32 1.0, %v1471_v35 }
 0x6b5   :  { %v951_v8 = vsub.f32 1.0, %v950_v43 }
 0x6b6   :  { %1472 = vrcp.f32 %v968_v36  ;;  %v980_v47 = vand.u32 2147483648, %v968_v36  ;;  %vm974_vm13 = vweird.f32 %v968_v36  ;;  %v978_v49 = vand.u32 2147483647, %v968_v36 }
 0x6b7   :  { %v952_v10 = vmul.f32 %v1469_v7, %v951_v8 }
 0x6b8   :  { %v981_v58 = vor.u32 1.1754944e-38, %v980_v47  ;;  %vm979_vm15 = vcmp.eq.f32.partialorder %v978_v49, 8.507059e+37 }
 0x6b9   :  { %v953_v12 = vadd.f32 %v1469_v7, %v952_v10 }
 0x6bb   :  { %v957_v14 = vsel %vm956_vm10, %v1469_v7, %v953_v12 }
 0x6bc   :  { %v962_v15 = vsel %vm959_vm11, %v961_v13, %v957_v14  ;;  %v1473_v37 = vpop.eup %1472 }
 0x6bd   :  { %v984_v16 = vmul.f32 %v962_v15, %v2261_v46  ;;  %v970_v38 = vmul.f32 %v1473_v37, %v968_v36  ;;  %vm975_vm12 = vweird.f32 %v1473_v37 }
 0x6be   :  { %vm976_vm14 = vmor %vm974_vm13, %vm975_vm12 }
 0x6bf   :  { %1017 = vmatmul.f32.vlgmr.msra.gmra.mxu1 %v984_v16  ;;  %v971_v39 = vsub.f32 1.0, %v970_v38 }
 0x6c1   :  { %v972_v40 = vmul.f32 %v1473_v37, %v971_v39 }
 0x6c3   :  { %v973_v42 = vadd.f32 %v1473_v37, %v972_v40 }
 0x6c5   :  { %v977_v56 = vsel %vm976_vm14, %v1473_v37, %v973_v42 }
 0x6c6   :  { %v982_v61 = vsel %vm979_vm15, %v981_v58, %v977_v56 }
 0x6c7   :  { %v1024_v0 = vsub.f32 1.0, %v982_v61  ;;  %v1023_v19 = vmul.f32 %v982_v61, %v2261_v46  ;;  %v1192_v61 = vld [vmem:[#allocation2 + $0xb0] sm:$0xff] }
 0x73c   :  { %v1018_v52 = vpop.f32.mrf.mxu1 }
 0x73d   :  { %v1021_v54 = vadd.f32 %v1018_v52, %v871_v41 }
 0x73f   :  { %1474 = vtanh.f32 %v1021_v54 }
 0x745   :  { %v1475_v2 = vpop.eup %1474 }
 0x746   :  { %v1025_v22 = vmul.f32 %v1475_v2, %v1024_v0 }
 0x748   :  { %v1026_v48 = vadd.f32 %v1025_v22, %v1023_v19 }
 0x74a   :  { %1028 = vst [vmem:[#allocation8 + $0x28] sm:$0xff] %v1026_v48  ;;  %1081 = vmatmul.f32.vlgmr.msra.gmra.mxu2 %v1026_v48  ;;  %1101 = vmatmul.f32.vlgmr.msra.gmra.mxu3 %v1026_v48 }
 0x7cd   :  { %v1082_v53 = vpop.f32.mrf.mxu2  ;;  %v1102_v33 = vpop.f32.mrf.mxu3 }
 0x7ce   :  { %v1105_v55 = vadd.f32 %v1082_v53, %v1030_v50  ;;  %v1125_v34 = vadd.f32 %v1102_v33, %v1031_v32 }
 0x7d0   :  { %v1400_v57 = vmul.f32 -1.442695, %v1105_v55  ;;  %v1401_v44 = vmul.f32 -1.442695, %v1125_v34 }
 0x7d2   :  { %1476 = vpow2.f32 %v1400_v57 }
 0x7d8   :  { %v1477_v59 = vpop.eup %1476 }
 0x7d9   :  { %v1109_v62 = vadd.f32 1.0, %v1477_v59  ;;  %v1193_v59 = vld [vmem:[#allocation2 + $0xb8] sm:$0xff] }
 0x7db   :  { %1478 = vrcp.f32 %v1109_v62  ;;  %v1121_v23 = vand.u32 2147483648, %v1109_v62  ;;  %v1119_v26 = vand.u32 2147483647, %v1109_v62  ;;  %vm1115_vm1 = vweird.f32 %v1109_v62 }
 0x7dc   :  { %1480 = vpow2.f32 %v1401_v44 }
 0x7dd   :  { %v1122_v28 = vor.u32 1.1754944e-38, %v1121_v23  ;;  %vm1120_vm3 = vcmp.eq.f32.partialorder %v1119_v26, 8.507059e+37 }
 0x7e1   :  { %v1479_v1 = vpop.eup %1478 }
 0x7e2   :  { %v1111_v3 = vmul.f32 %v1479_v1, %v1109_v62  ;;  %vm1116_vm0 = vweird.f32 %v1479_v1  ;;  %v1481_v45 = vpop.eup %1480 }
 0x7e3   :  { %vm1117_vm2 = vmor %vm1115_vm1, %vm1116_vm0  ;;  %v1129_v46 = vadd.f32 1.0, %v1481_v45 }
 0x7e4   :  { %v1112_v20 = vsub.f32 1.0, %v1111_v3 }
 0x7e5   :  { %1482 = vrcp.f32 %v1129_v46  ;;  %v1141_v7 = vand.u32 2147483648, %v1129_v46  ;;  %vm1135_vm5 = vweird.f32 %v1129_v46  ;;  %v1139_v43 = vand.u32 2147483647, %v1129_v46 }
 0x7e6   :  { %v1113_v25 = vmul.f32 %v1479_v1, %v1112_v20 }
 0x7e7   :  { %v1142_v11 = vor.u32 1.1754944e-38, %v1141_v7  ;;  %vm1140_vm7 = vcmp.eq.f32.partialorder %v1139_v43, 8.507059e+37 }
 0x7e8   :  { %v1114_v27 = vadd.f32 %v1479_v1, %v1113_v25 }
 0x7ea   :  { %v1118_v29 = vsel %vm1117_vm2, %v1479_v1, %v1114_v27 }
 0x7eb   :  { %v1123_v30 = vsel %vm1120_vm3, %v1122_v28, %v1118_v29  ;;  %v1483_v51 = vpop.eup %1482 }
 0x7ec   :  { %v1145_v31 = vmul.f32 %v1123_v30, %v1026_v48  ;;  %v1131_v60 = vmul.f32 %v1483_v51, %v1129_v46  ;;  %vm1136_vm4 = vweird.f32 %v1483_v51 }
 0x7ed   :  { %vm1137_vm6 = vmor %vm1135_vm5, %vm1136_vm4 }
 0x7ee   :  { %1178 = vmatmul.f32.vlgmr.msrb.gmra.mxu0 %v1145_v31  ;;  %v1132_v63 = vsub.f32 1.0, %v1131_v60 }
 0x7f0   :  { %v1133_v4 = vmul.f32 %v1483_v51, %v1132_v63 }
 0x7f2   :  { %v1134_v6 = vadd.f32 %v1483_v51, %v1133_v4 }
 0x7f4   :  { %v1138_v10 = vsel %vm1137_vm6, %v1483_v51, %v1134_v6 }
 0x7f5   :  { %v1143_v12 = vsel %vm1140_vm7, %v1142_v11, %v1138_v10 }
 0x7f6   :  { %v1185_v13 = vsub.f32 1.0, %v1143_v12  ;;  %v1184_v15 = vmul.f32 %v1143_v12, %v1026_v48 }
 0x86b   :  { %v1179_v8 = vpop.f32.mrf.mxu0 }
 0x86c   :  { %v1182_v9 = vadd.f32 %v1179_v8, %v1032_v5 }
 0x86e   :  { %1484 = vtanh.f32 %v1182_v9 }
 0x874   :  { %v1485_v14 = vpop.eup %1484 }
 0x875   :  { %v1186_v16 = vmul.f32 %v1485_v14, %v1185_v13 }
 0x877   :  { %v1187_v17 = vadd.f32 %v1186_v16, %v1184_v15 }
 0x879   :  { %1189 = vst [vmem:[#allocation8 + $0x30] sm:$0xff] %v1187_v17  ;;  %1242 = vmatmul.f32.vlgmr.msrb.gmra.mxu1 %v1187_v17  ;;  %1262 = vmatmul.f32.vlgmr.msrb.gmra.mxu2 %v1187_v17 }
 0x8f6   :  { %v1243_v21 = vpop.f32.mrf.mxu1 }
 0x8f7   :  { %v1266_v24 = vadd.f32 %v1243_v21, %v1191_v18 }
 0x8f9   :  { %v1402_v35 = vmul.f32 -1.442695, %v1266_v24 }
 0x8fb   :  { %1486 = vpow2.f32 %v1402_v35 }
 0x8fc   :  { %v1263_v0 = vpop.f32.mrf.mxu2 }
 0x8fd   :  { %v1286_v2 = vadd.f32 %v1263_v0, %v1192_v61 }
 0x8ff   :  { %v1403_v19 = vmul.f32 -1.442695, %v1286_v2 }
 0x901   :  { %v1487_v36 = vpop.eup %1486 }
 0x902   :  { %v1270_v37 = vadd.f32 1.0, %v1487_v36 }
 0x904   :  { %1488 = vrcp.f32 %v1270_v37  ;;  %v1282_v41 = vand.u32 2147483648, %v1270_v37  ;;  %v1280_v47 = vand.u32 2147483647, %v1270_v37  ;;  %vm1276_vm9 = vweird.f32 %v1270_v37 }
 0x905   :  { %1490 = vpow2.f32 %v1403_v19 }
 0x906   :  { %v1283_v52 = vor.u32 1.1754944e-38, %v1282_v41  ;;  %vm1281_vm11 = vcmp.eq.f32.partialorder %v1280_v47, 8.507059e+37 }
 0x90a   :  { %v1489_v38 = vpop.eup %1488 }
 0x90b   :  { %v1272_v39 = vmul.f32 %v1489_v38, %v1270_v37  ;;  %vm1277_vm8 = vweird.f32 %v1489_v38  ;;  %v1491_v22 = vpop.eup %1490 }
 0x90c   :  { %vm1278_vm10 = vmor %vm1276_vm9, %vm1277_vm8  ;;  %v1290_v48 = vadd.f32 1.0, %v1491_v22 }
 0x90d   :  { %v1273_v40 = vsub.f32 1.0, %v1272_v39 }
 0x90e   :  { %1492 = vrcp.f32 %v1290_v48  ;;  %v1302_v1 = vand.u32 2147483648, %v1290_v48  ;;  %vm1296_vm13 = vweird.f32 %v1290_v48  ;;  %v1300_v3 = vand.u32 2147483647, %v1290_v48 }
 0x90f   :  { %v1274_v42 = vmul.f32 %v1489_v38, %v1273_v40 }
 0x910   :  { %v1303_v26 = vor.u32 1.1754944e-38, %v1302_v1  ;;  %vm1301_vm15 = vcmp.eq.f32.partialorder %v1300_v3, 8.507059e+37 }
 0x911   :  { %v1275_v49 = vadd.f32 %v1489_v38, %v1274_v42 }
 0x913   :  { %v1279_v54 = vsel %vm1278_vm10, %v1489_v38, %v1275_v49 }
 0x914   :  { %v1284_v56 = vsel %vm1281_vm11, %v1283_v52, %v1279_v54  ;;  %v1493_v50 = vpop.eup %1492 }
 0x915   :  { %v1306_v58 = vmul.f32 %v1284_v56, %v1187_v17  ;;  %v1292_v53 = vmul.f32 %v1493_v50, %v1290_v48  ;;  %vm1297_vm12 = vweird.f32 %v1493_v50 }
 0x916   :  { %vm1298_vm14 = vmor %vm1296_vm13, %vm1297_vm12 }
 0x917   :  { %1339 = vmatmul.f32.vlgmr.msrb.gmra.mxu3 %v1306_v58  ;;  %v1293_v55 = vsub.f32 1.0, %v1292_v53 }
 0x919   :  { %v1294_v57 = vmul.f32 %v1493_v50, %v1293_v55 }
 0x91b   :  { %v1295_v62 = vadd.f32 %v1493_v50, %v1294_v57 }
 0x91d   :  { %v1299_v25 = vsel %vm1298_vm14, %v1493_v50, %v1295_v62 }
 0x91e   :  { %v1304_v27 = vsel %vm1301_vm15, %v1303_v26, %v1299_v25 }
 0x91f   :  { %v1346_v28 = vsub.f32 1.0, %v1304_v27  ;;  %v1345_v30 = vmul.f32 %v1304_v27, %v1187_v17 }
 0x99a   :  { %v1340_v20 = vpop.f32.mrf.mxu3 }
 0x99b   :  { %v1343_v23 = vadd.f32 %v1340_v20, %v1193_v59 }
 0x99d   :  { %1494 = vtanh.f32 %v1343_v23 }
 0x9a3   :  { %v1495_v29 = vpop.eup %1494 }
 0x9a4   :  { %v1347_v31 = vmul.f32 %v1495_v29, %v1346_v28 }
 0x9a6   :  { %v1348_v32 = vadd.f32 %v1347_v31, %v1345_v30 }
 0x9a8   :  { %1350 = vst [vmem:[#allocation8 + $0x38] sm:$0xff] %v1348_v32 }
 0x9a9   :  { %1351 = vst [vmem:[#allocation9] sm:$0xff] %v1348_v32  ;;  %1364 = dma.vmem_to_hbm [thread:$0]  %s1357_s8, 1024, %s1359_s11, [#allocation4], %s1631_s7, %s1631_s7, %s1632_s0  }
 0x9aa   :  { %1375 = dma.vmem_to_hbm [thread:$0]  %s1371_s13, 128, %s1373_s16, [#allocation10]  }
 0x9ab   :  { %1620 = dma.done.wait [#allocation4], 1024  }
 0x9ac   :  { %1621 = vsyncadd [#allocation4], 4294966272 }
 0x9ad   :  { %1622 = dma.done.wait [#allocation10], 128  }
 0x9ae   :  { %1623 = vsyncadd [#allocation10], 4294967168 }
 0x9af   :  { %1384 = vsyncpa [#allocation3], 1 }
 0x9b0   :  { %1385 = vsyncpa [#allocation6], 1 }
 0x9b1   :  { %1386 = vsyncpa [#allocation4], 1 }
 0x9b2   :  { %1387 = vsyncpa [#allocation10], 1 }

</bundles_post_ra>
